<compile_context>
chip_gen: v6e
topology: v6e:2x2x1
jax: 0.10.0
libtpu: 0.0.40
codegen_flags: <defaults>
</compile_context>

<pallas_src>
import functools

import jax
import jax.numpy as jnp
from jax.experimental import pallas as pl

# ----------------------------- config (small) --------------------------------
T = 8                      # num tokens
HIDDEN = 128               # hidden_size
NUM_HEADS = 4
NUM_KV_HEADS = 2
HEAD_DIM = HIDDEN // NUM_HEADS            # 32
Q_SIZE = NUM_HEADS * HEAD_DIM             # 128
KV_SIZE = NUM_KV_HEADS * HEAD_DIM         # 64
INTERMEDIATE = 256
NUM_EXPERTS = 4
TOP_K = 2                                 # top-2 of 4
GATE_PAD = 128                            # lane-padded router width
RMS_EPS = 1e-5
ROPE_THETA = 10000.0
SCALING = HEAD_DIM ** -0.5
DTYPE = jnp.float32                       # activation dtype (I/O)
WDTYPE = jnp.bfloat16                     # weight dtype at the MXU


# ------------------------------ Pallas kernels -------------------------------
def _attn_block_kernel(x_ref, r_ref, ln_w_ref, cos_ref, sin_ref,
                       qkv_w_ref, o_w_ref, attn_o_ref, res_o_ref):
    """Fused: (x + residual) -> RMSNorm -> QKV -> RoPE -> causal GQA attn -> o_proj."""
    f32 = jnp.float32

    # residual add + RMSNorm (f32)
    x = x_ref[...].astype(f32) + r_ref[...].astype(f32)
    res_o_ref[...] = x.astype(res_o_ref.dtype)
    var = jnp.mean(x * x, axis=-1, keepdims=True)
    h = x * jax.lax.rsqrt(var + RMS_EPS) * ln_w_ref[...].astype(f32)

    # fused QKV projection (bf16 operands, f32 accumulation on the MXU)
    qkv = jnp.dot(h.astype(jnp.bfloat16), qkv_w_ref[...],
                  preferred_element_type=f32)                  # (T, Q_SIZE + 2*KV_SIZE)
    q = qkv[:, :Q_SIZE]
    k = qkv[:, Q_SIZE:Q_SIZE + KV_SIZE]
    v = qkv[:, Q_SIZE + KV_SIZE:]

    # neox rotate-half RoPE applied per head on the lane-packed layout
    cos = cos_ref[...]                                         # (T, HEAD_DIM//2) f32
    sin = sin_ref[...]
    half = HEAD_DIM // 2

    def rope_head(xh):                                         # xh: (T, HEAD_DIM)
        x1 = xh[:, :half]
        x2 = xh[:, half:]
        return jnp.concatenate([x1 * cos - x2 * sin, x2 * cos + x1 * sin], axis=-1)

    t = x.shape[0]
    row = jax.lax.broadcasted_iota(jnp.int32, (t, t), 0)
    col = jax.lax.broadcasted_iota(jnp.int32, (t, t), 1)
    causal = col <= row

    rep = NUM_HEADS // NUM_KV_HEADS
    # Slice each KV head once and reuse it for its query group (GQA without jnp.repeat).
    k_rot = [rope_head(k[:, i * HEAD_DIM:(i + 1) * HEAD_DIM]) for i in range(NUM_KV_HEADS)]
    v_h = [v[:, i * HEAD_DIM:(i + 1) * HEAD_DIM] for i in range(NUM_KV_HEADS)]

    outs = []
    for hh in range(NUM_HEADS):                 # static unroll; heads stay on the lane axis
        qh = rope_head(q[:, hh * HEAD_DIM:(hh + 1) * HEAD_DIM])
        kh = k_rot[hh // rep]
        vh = v_h[hh // rep]
        s = jnp.dot(qh, kh.T, preferred_element_type=f32) * SCALING
        s = jnp.where(causal, s, -1e30)
        s = s - jnp.max(s, axis=-1, keepdims=True)
        p = jnp.exp(s)
        p = p * pl.reciprocal(jnp.sum(p, axis=-1, keepdims=True), approx=True)
        outs.append(jnp.dot(p, vh, preferred_element_type=f32))
    attn = jnp.concatenate(outs, axis=-1)                      # (T, Q_SIZE) lane-dense

    out = jnp.dot(attn.astype(jnp.bfloat16), o_w_ref[...],
                  preferred_element_type=f32)                  # o_proj
    attn_o_ref[...] = out.astype(attn_o_ref.dtype)


def _moe_block_kernel(x_ref, r_ref, ln_w_ref, gate_w_ref, w13_ref, w2_ref,
                      out_ref, res_o_ref):
    """Fused: (x + residual) -> RMSNorm -> router (softmax, top-2, renorm) -> SwiGLU MoE."""
    f32 = jnp.float32

    x = x_ref[...].astype(f32) + r_ref[...].astype(f32)
    res_o_ref[...] = x.astype(res_o_ref.dtype)
    var = jnp.mean(x * x, axis=-1, keepdims=True)
    h = x * jax.lax.rsqrt(var + RMS_EPS) * ln_w_ref[...].astype(f32)
    hb = h.astype(jnp.bfloat16)

    # ---- router: lane-padded gate matmul; logits/softmax/top-k never leave the kernel ----
    logits = jnp.dot(hb, gate_w_ref[...], preferred_element_type=f32)   # (T, GATE_PAD)
    lane = jax.lax.broadcasted_iota(jnp.int32, logits.shape, 1)
    logits = jnp.where(lane < NUM_EXPERTS, logits, -1e30)
    logits = logits - jnp.max(logits, axis=-1, keepdims=True)
    expz = jnp.exp(logits)
    probs = expz * pl.reciprocal(jnp.sum(expz, axis=-1, keepdims=True), approx=True)

    # top-2 selection + renormalization (matches FusedMoE renormalize=True)
    # TODO(synk): exact ties between expert probabilities could keep >TOP_K experts
    #             (measure-zero for float router logits).
    m1 = jnp.max(probs, axis=-1, keepdims=True)
    wo1 = jnp.where(probs >= m1, -1.0, probs)
    m2 = jnp.max(wo1, axis=-1, keepdims=True)
    keep = probs >= m2
    rw = jnp.where(keep, probs, 0.0)
    rw = rw * pl.reciprocal(jnp.sum(rw, axis=-1, keepdims=True), approx=True)

    # ---- experts: one big [w1||w3] matmul across all experts, per-expert down-proj ----
    gu = jnp.dot(hb, w13_ref[...], preferred_element_type=f32)          # (T, E*2*I)
    acc = jnp.zeros(out_ref.shape, f32)
    for e in range(NUM_EXPERTS):                # static unroll; weights zero if not in top-2
        base = e * 2 * INTERMEDIATE
        g = gu[:, base:base + INTERMEDIATE]
        u = gu[:, base + INTERMEDIATE:base + 2 * INTERMEDIATE]
        act = (g * jax.nn.sigmoid(g)) * u                               # SiLU(gate) * up
        d = jnp.dot(act.astype(jnp.bfloat16), w2_ref[e], preferred_element_type=f32)
        acc = acc + rw[:, e:e + 1] * d
    out_ref[...] = acc.astype(out_ref.dtype)


# ------------------------------ pallas wrappers -------------------------------
def _fs(shape):
    return pl.BlockSpec(shape, lambda: (0,) * len(shape))


def fused_attention_block(hidden, residual, ln_w, cos_h, sin_h, qkv_w, o_w):
    t, hdim = hidden.shape
    return pl.pallas_call(
        _attn_block_kernel,
        out_shape=(jax.ShapeDtypeStruct((t, hdim), hidden.dtype),
                   jax.ShapeDtypeStruct((t, hdim), hidden.dtype)),
        in_specs=[_fs(hidden.shape), _fs(residual.shape), _fs(ln_w.shape),
                  _fs(cos_h.shape), _fs(sin_h.shape), _fs(qkv_w.shape), _fs(o_w.shape)],
        out_specs=(_fs((t, hdim)), _fs((t, hdim))),
    )(hidden, residual, ln_w, cos_h, sin_h, qkv_w, o_w)


def fused_moe_block(hidden, residual, ln_w, gate_w, w13, w2):
    t, hdim = hidden.shape
    return pl.pallas_call(
        _moe_block_kernel,
        out_shape=(jax.ShapeDtypeStruct((t, hdim), hidden.dtype),
                   jax.ShapeDtypeStruct((t, hdim), hidden.dtype)),
        in_specs=[_fs(hidden.shape), _fs(residual.shape), _fs(ln_w.shape),
                  _fs(gate_w.shape), _fs(w13.shape), _fs(w2.shape)],
        out_specs=(_fs((t, hdim)), _fs((t, hdim))),
    )(hidden, residual, ln_w, gate_w, w13, w2)


# ------------------------------ model glue ------------------------------------
def make_params(key):
    ks = jax.random.split(key, 6)
    scale = 0.02
    qkv_w = (scale * jax.random.normal(ks[0], (HIDDEN, Q_SIZE + 2 * KV_SIZE))).astype(WDTYPE)
    o_w = (scale * jax.random.normal(ks[1], (Q_SIZE, HIDDEN))).astype(WDTYPE)

    gate = scale * jax.random.normal(ks[2], (HIDDEN, NUM_EXPERTS))
    gate_pad = jnp.zeros((HIDDEN, GATE_PAD), jnp.float32).at[:, :NUM_EXPERTS].set(gate)

    w1 = scale * jax.random.normal(ks[3], (NUM_EXPERTS, HIDDEN, INTERMEDIATE))
    w3 = scale * jax.random.normal(ks[4], (NUM_EXPERTS, HIDDEN, INTERMEDIATE))
    # concat gate/up per expert, then pack experts along the lane axis: (HIDDEN, E*2*I)
    w13 = jnp.concatenate([w1, w3], axis=-1)                     # (E, H, 2I)
    w13 = jnp.transpose(w13, (1, 0, 2)).reshape(HIDDEN, NUM_EXPERTS * 2 * INTERMEDIATE)
    w2 = scale * jax.random.normal(ks[5], (NUM_EXPERTS, INTERMEDIATE, HIDDEN))

    return {
        "ln1_w": jnp.ones((1, HIDDEN), jnp.float32),
        "ln2_w": jnp.ones((1, HIDDEN), jnp.float32),
        "qkv_w": qkv_w,
        "o_w": o_w,
        "gate_w": gate_pad.astype(WDTYPE),
        "w13": w13.astype(WDTYPE),
        "w2": w2.astype(WDTYPE),
    }


def _rope_tables(positions):
    half = HEAD_DIM // 2
    inv_freq = 1.0 / (ROPE_THETA ** (jnp.arange(0, HEAD_DIM, 2, dtype=jnp.float32) / HEAD_DIM))
    freqs = positions.astype(jnp.float32)[:, None] * inv_freq[None, :]   # (T, half)
    return jnp.cos(freqs), jnp.sin(freqs)


@jax.jit
def mixtral_decoder_layer(positions, hidden_states, params, residual=None):
    # residual=None <=> residual starts as hidden_states; adding zeros reproduces that.
    if residual is None:
        residual = jnp.zeros_like(hidden_states)
    cos_h, sin_h = _rope_tables(positions)

    # --- input_layernorm + self attention + o_proj (one kernel) ---
    attn_out, residual = fused_attention_block(
        hidden_states, residual, params["ln1_w"], cos_h, sin_h,
        params["qkv_w"], params["o_w"])

    # --- post_attention_layernorm + block sparse MoE (one kernel) ---
    moe_out, residual = fused_moe_block(
        attn_out, residual, params["ln2_w"],
        params["gate_w"], params["w13"], params["w2"])
    return moe_out, residual


if __name__ == "__main__":
    key = jax.random.PRNGKey(0)
    pkey, xkey = jax.random.split(key)
    params = make_params(pkey)

    positions = jnp.arange(T, dtype=jnp.int32)
    hidden_states = jax.random.normal(xkey, (T, HIDDEN), dtype=DTYPE)

    out, residual = mixtral_decoder_layer(positions, hidden_states, params, None)
    out = jax.block_until_ready(out)
    residual = jax.block_until_ready(residual)
    assert out.shape == (T, HIDDEN) and residual.shape == (T, HIDDEN)
    assert bool(jnp.all(jnp.isfinite(out))) and bool(jnp.all(jnp.isfinite(residual)))
    print("KERNEL_OK")
</pallas_src>

<mosaic_0001>
module attributes {stable_mosaic.version = 11 : i64} {
  func.func @_attn_block_kernel(%arg0: memref<8x128xf32, #tpu.memory_space<vmem>>, %arg1: memref<8x128xf32, #tpu.memory_space<vmem>>, %arg2: memref<1x128xf32, #tpu.memory_space<vmem>>, %arg3: memref<8x16xf32, #tpu.memory_space<vmem>>, %arg4: memref<8x16xf32, #tpu.memory_space<vmem>>, %arg5: memref<128x256xbf16, #tpu.memory_space<vmem>>, %arg6: memref<128x128xbf16, #tpu.memory_space<vmem>>, %arg7: memref<8x128xf32, #tpu.memory_space<vmem>>, %arg8: memref<8x128xf32, #tpu.memory_space<vmem>>) attributes {dimension_semantics = [], scalar_prefetch = 0 : i64, scratch_operands = 0 : i64, tpu.core_type = #tpu.core_type<tc>} {
    %c0 = arith.constant 0 : index
    %c0_0 = arith.constant 0 : index
    %0 = vector.load %arg0[%c0, %c0_0] : memref<8x128xf32, #tpu.memory_space<vmem>>, vector<8x128xf32>
    %c0_1 = arith.constant 0 : index
    %c0_2 = arith.constant 0 : index
    %1 = vector.load %arg1[%c0_1, %c0_2] : memref<8x128xf32, #tpu.memory_space<vmem>>, vector<8x128xf32>
    %2 = arith.addf %0, %1 : vector<8x128xf32>
    %c0_3 = arith.constant 0 : index
    %c0_4 = arith.constant 0 : index
    %3 = vector.load %arg8[%c0_3, %c0_4] : memref<8x128xf32, #tpu.memory_space<vmem>>, vector<8x128xf32>
    tpu.vector_store %arg8[%c0_3, %c0_4], %2 {strides = array<i32>} : memref<8x128xf32, #tpu.memory_space<vmem>>, vector<8x128xf32>,
    %4 = arith.mulf %2, %2 : vector<8x128xf32>
    %cst = arith.constant dense<0.000000e+00> : vector<8xf32>
    %5 = vector.multi_reduction <add>, %4, %cst [1] : vector<8x128xf32> to vector<8xf32>
    %6 = vector.shape_cast %5 : vector<8xf32> to vector<8x1xf32>
    %cst_5 = arith.constant 1.280000e+02 : f32
    %7 = vector.broadcast %cst_5 : f32 to vector<8x1xf32>
    %8 = arith.divf %6, %7 : vector<8x1xf32>
    %cst_6 = arith.constant 9.99999974E-6 : f32
    %9 = vector.broadcast %cst_6 : f32 to vector<8x1xf32>
    %10 = arith.addf %8, %9 : vector<8x1xf32>
    %11 = math.rsqrt %10 : vector<8x1xf32>
    %12 = vector.broadcast %11 : vector<8x1xf32> to vector<8x128xf32>
    %13 = arith.mulf %2, %12 : vector<8x128xf32>
    %c0_7 = arith.constant 0 : index
    %c0_8 = arith.constant 0 : index
    %14 = vector.load %arg2[%c0_7, %c0_8] : memref<1x128xf32, #tpu.memory_space<vmem>>, vector<1x128xf32>
    %15 = vector.broadcast %14 : vector<1x128xf32> to vector<8x128xf32>
    %16 = arith.mulf %13, %15 : vector<8x128xf32>
    %17 = arith.truncf %16 : vector<8x128xf32> to vector<8x128xbf16>
    %c0_9 = arith.constant 0 : index
    %c0_10 = arith.constant 0 : index
    %18 = vector.load %arg5[%c0_9, %c0_10] : memref<128x256xbf16, #tpu.memory_space<vmem>>, vector<128x256xbf16>
    %cst_11 = arith.constant dense<0.000000e+00> : vector<8x256xf32>
    %19 = tpu.matmul %17, %18, %cst_11 {dimension_numbers = #tpu.dot_dimension_numbers<[1], [0], [0], [1], [0, 0, 1, 1], [], []>} : vector<8x128xbf16>, vector<128x256xbf16>, vector<8x256xf32> -> vector<8x256xf32>
    %20 = vector.extract_strided_slice %19 {offsets = [0, 0], sizes = [8, 128], strides = [1, 1]} : vector<8x256xf32> to vector<8x128xf32>
    %21 = vector.extract_strided_slice %19 {offsets = [0, 128], sizes = [8, 64], strides = [1, 1]} : vector<8x256xf32> to vector<8x64xf32>
    %22 = vector.extract_strided_slice %19 {offsets = [0, 192], sizes = [8, 64], strides = [1, 1]} : vector<8x256xf32> to vector<8x64xf32>
    %c0_12 = arith.constant 0 : index
    %c0_13 = arith.constant 0 : index
    %23 = vector.load %arg3[%c0_12, %c0_13] : memref<8x16xf32, #tpu.memory_space<vmem>>, vector<8x16xf32>
    %c0_14 = arith.constant 0 : index
    %c0_15 = arith.constant 0 : index
    %24 = vector.load %arg4[%c0_14, %c0_15] : memref<8x16xf32, #tpu.memory_space<vmem>>, vector<8x16xf32>
    %25 = tpu.iota {dimensions = array<i32: 0>} : vector<8x8xi32>
    %26 = tpu.iota {dimensions = array<i32: 1>} : vector<8x8xi32>
    %27 = arith.cmpi sle, %26, %25 : vector<8x8xi32>
    %28 = vector.extract_strided_slice %21 {offsets = [0, 0], sizes = [8, 32], strides = [1, 1]} : vector<8x64xf32> to vector<8x32xf32>
    %29 = vector.extract_strided_slice %28 {offsets = [0, 0], sizes = [8, 16], strides = [1, 1]} : vector<8x32xf32> to vector<8x16xf32>
    %30 = vector.extract_strided_slice %28 {offsets = [0, 16], sizes = [8, 16], strides = [1, 1]} : vector<8x32xf32> to vector<8x16xf32>
    %31 = arith.mulf %29, %23 : vector<8x16xf32>
    %32 = arith.mulf %30, %24 : vector<8x16xf32>
    %33 = arith.subf %31, %32 : vector<8x16xf32>
    %34 = arith.mulf %30, %23 : vector<8x16xf32>
    %35 = arith.mulf %29, %24 : vector<8x16xf32>
    %36 = arith.addf %34, %35 : vector<8x16xf32>
    %37 = tpu.concatenate %33, %36 in 1 : vector<8x16xf32>, vector<8x16xf32> -> vector<8x32xf32>
    %38 = vector.extract_strided_slice %21 {offsets = [0, 32], sizes = [8, 32], strides = [1, 1]} : vector<8x64xf32> to vector<8x32xf32>
    %39 = vector.extract_strided_slice %38 {offsets = [0, 0], sizes = [8, 16], strides = [1, 1]} : vector<8x32xf32> to vector<8x16xf32>
    %40 = vector.extract_strided_slice %38 {offsets = [0, 16], sizes = [8, 16], strides = [1, 1]} : vector<8x32xf32> to vector<8x16xf32>
    %41 = arith.mulf %39, %23 : vector<8x16xf32>
    %42 = arith.mulf %40, %24 : vector<8x16xf32>
    %43 = arith.subf %41, %42 : vector<8x16xf32>
    %44 = arith.mulf %40, %23 : vector<8x16xf32>
    %45 = arith.mulf %39, %24 : vector<8x16xf32>
    %46 = arith.addf %44, %45 : vector<8x16xf32>
    %47 = tpu.concatenate %43, %46 in 1 : vector<8x16xf32>, vector<8x16xf32> -> vector<8x32xf32>
    %48 = vector.extract_strided_slice %22 {offsets = [0, 0], sizes = [8, 32], strides = [1, 1]} : vector<8x64xf32> to vector<8x32xf32>
    %49 = vector.extract_strided_slice %22 {offsets = [0, 32], sizes = [8, 32], strides = [1, 1]} : vector<8x64xf32> to vector<8x32xf32>
    %50 = vector.extract_strided_slice %20 {offsets = [0, 0], sizes = [8, 32], strides = [1, 1]} : vector<8x128xf32> to vector<8x32xf32>
    %51 = vector.extract_strided_slice %50 {offsets = [0, 0], sizes = [8, 16], strides = [1, 1]} : vector<8x32xf32> to vector<8x16xf32>
    %52 = vector.extract_strided_slice %50 {offsets = [0, 16], sizes = [8, 16], strides = [1, 1]} : vector<8x32xf32> to vector<8x16xf32>
    %53 = arith.mulf %51, %23 : vector<8x16xf32>
    %54 = arith.mulf %52, %24 : vector<8x16xf32>
    %55 = arith.subf %53, %54 : vector<8x16xf32>
    %56 = arith.mulf %52, %23 : vector<8x16xf32>
    %57 = arith.mulf %51, %24 : vector<8x16xf32>
    %58 = arith.addf %56, %57 : vector<8x16xf32>
    %59 = tpu.concatenate %55, %58 in 1 : vector<8x16xf32>, vector<8x16xf32> -> vector<8x32xf32>
    %60 = tpu.transpose %37, [1, 0] : vector<8x32xf32> -> vector<32x8xf32>
    %cst_16 = arith.constant dense<0.000000e+00> : vector<8x8xf32>
    %61 = tpu.matmul %59, %60, %cst_16 {dimension_numbers = #tpu.dot_dimension_numbers<[1], [0], [0], [1], [0, 0, 1, 1], [], []>} : vector<8x32xf32>, vector<32x8xf32>, vector<8x8xf32> -> vector<8x8xf32>
    %cst_17 = arith.constant 0.176776692 : f32
    %62 = vector.broadcast %cst_17 : f32 to vector<8x8xf32>
    %63 = arith.mulf %61, %62 : vector<8x8xf32>
    %cst_18 = arith.constant -1.000000e+30 : f32
    %64 = vector.broadcast %cst_18 : f32 to vector<8x8xf32>
    %65 = arith.select %27, %63, %64 : vector<8x8xi1>, vector<8x8xf32>
    %cst_19 = arith.constant dense<0xFF800000> : vector<8xf32>
    %66 = vector.multi_reduction <maximumf>, %65, %cst_19 [1] : vector<8x8xf32> to vector<8xf32>
    %67 = vector.shape_cast %66 : vector<8xf32> to vector<8x1xf32>
    %68 = vector.broadcast %67 : vector<8x1xf32> to vector<8x8xf32>
    %69 = arith.subf %65, %68 : vector<8x8xf32>
    %70 = math.exp %69 : vector<8x8xf32>
    %cst_20 = arith.constant dense<0.000000e+00> : vector<8xf32>
    %71 = vector.multi_reduction <add>, %70, %cst_20 [1] : vector<8x8xf32> to vector<8xf32>
    %72 = vector.shape_cast %71 : vector<8xf32> to vector<8x1xf32>
    %73 = tpu.reciprocal %72 {approx = true} : vector<8x1xf32> -> vector<8x1xf32>
    %74 = vector.broadcast %73 : vector<8x1xf32> to vector<8x8xf32>
    %75 = arith.mulf %70, %74 : vector<8x8xf32>
    %cst_21 = arith.constant dense<0.000000e+00> : vector<8x32xf32>
    %76 = tpu.matmul %75, %48, %cst_21 {dimension_numbers = #tpu.dot_dimension_numbers<[1], [0], [0], [1], [0, 0, 1, 1], [], []>} : vector<8x8xf32>, vector<8x32xf32>, vector<8x32xf32> -> vector<8x32xf32>
    %77 = vector.extract_strided_slice %20 {offsets = [0, 32], sizes = [8, 32], strides = [1, 1]} : vector<8x128xf32> to vector<8x32xf32>
    %78 = vector.extract_strided_slice %77 {offsets = [0, 0], sizes = [8, 16], strides = [1, 1]} : vector<8x32xf32> to vector<8x16xf32>
    %79 = vector.extract_strided_slice %77 {offsets = [0, 16], sizes = [8, 16], strides = [1, 1]} : vector<8x32xf32> to vector<8x16xf32>
    %80 = arith.mulf %78, %23 : vector<8x16xf32>
    %81 = arith.mulf %79, %24 : vector<8x16xf32>
    %82 = arith.subf %80, %81 : vector<8x16xf32>
    %83 = arith.mulf %79, %23 : vector<8x16xf32>
    %84 = arith.mulf %78, %24 : vector<8x16xf32>
    %85 = arith.addf %83, %84 : vector<8x16xf32>
    %86 = tpu.concatenate %82, %85 in 1 : vector<8x16xf32>, vector<8x16xf32> -> vector<8x32xf32>
    %87 = tpu.transpose %37, [1, 0] : vector<8x32xf32> -> vector<32x8xf32>
    %cst_22 = arith.constant dense<0.000000e+00> : vector<8x8xf32>
    %88 = tpu.matmul %86, %87, %cst_22 {dimension_numbers = #tpu.dot_dimension_numbers<[1], [0], [0], [1], [0, 0, 1, 1], [], []>} : vector<8x32xf32>, vector<32x8xf32>, vector<8x8xf32> -> vector<8x8xf32>
    %cst_23 = arith.constant 0.176776692 : f32
    %89 = vector.broadcast %cst_23 : f32 to vector<8x8xf32>
    %90 = arith.mulf %88, %89 : vector<8x8xf32>
    %cst_24 = arith.constant -1.000000e+30 : f32
    %91 = vector.broadcast %cst_24 : f32 to vector<8x8xf32>
    %92 = arith.select %27, %90, %91 : vector<8x8xi1>, vector<8x8xf32>
    %cst_25 = arith.constant dense<0xFF800000> : vector<8xf32>
    %93 = vector.multi_reduction <maximumf>, %92, %cst_25 [1] : vector<8x8xf32> to vector<8xf32>
    %94 = vector.shape_cast %93 : vector<8xf32> to vector<8x1xf32>
    %95 = vector.broadcast %94 : vector<8x1xf32> to vector<8x8xf32>
    %96 = arith.subf %92, %95 : vector<8x8xf32>
    %97 = math.exp %96 : vector<8x8xf32>
    %cst_26 = arith.constant dense<0.000000e+00> : vector<8xf32>
    %98 = vector.multi_reduction <add>, %97, %cst_26 [1] : vector<8x8xf32> to vector<8xf32>
    %99 = vector.shape_cast %98 : vector<8xf32> to vector<8x1xf32>
    %100 = tpu.reciprocal %99 {approx = true} : vector<8x1xf32> -> vector<8x1xf32>
    %101 = vector.broadcast %100 : vector<8x1xf32> to vector<8x8xf32>
    %102 = arith.mulf %97, %101 : vector<8x8xf32>
    %cst_27 = arith.constant dense<0.000000e+00> : vector<8x32xf32>
    %103 = tpu.matmul %102, %48, %cst_27 {dimension_numbers = #tpu.dot_dimension_numbers<[1], [0], [0], [1], [0, 0, 1, 1], [], []>} : vector<8x8xf32>, vector<8x32xf32>, vector<8x32xf32> -> vector<8x32xf32>
    %104 = vector.extract_strided_slice %20 {offsets = [0, 64], sizes = [8, 32], strides = [1, 1]} : vector<8x128xf32> to vector<8x32xf32>
    %105 = vector.extract_strided_slice %104 {offsets = [0, 0], sizes = [8, 16], strides = [1, 1]} : vector<8x32xf32> to vector<8x16xf32>
    %106 = vector.extract_strided_slice %104 {offsets = [0, 16], sizes = [8, 16], strides = [1, 1]} : vector<8x32xf32> to vector<8x16xf32>
    %107 = arith.mulf %105, %23 : vector<8x16xf32>
    %108 = arith.mulf %106, %24 : vector<8x16xf32>
    %109 = arith.subf %107, %108 : vector<8x16xf32>
    %110 = arith.mulf %106, %23 : vector<8x16xf32>
    %111 = arith.mulf %105, %24 : vector<8x16xf32>
    %112 = arith.addf %110, %111 : vector<8x16xf32>
    %113 = tpu.concatenate %109, %112 in 1 : vector<8x16xf32>, vector<8x16xf32> -> vector<8x32xf32>
    %114 = tpu.transpose %47, [1, 0] : vector<8x32xf32> -> vector<32x8xf32>
    %cst_28 = arith.constant dense<0.000000e+00> : vector<8x8xf32>
    %115 = tpu.matmul %113, %114, %cst_28 {dimension_numbers = #tpu.dot_dimension_numbers<[1], [0], [0], [1], [0, 0, 1, 1], [], []>} : vector<8x32xf32>, vector<32x8xf32>, vector<8x8xf32> -> vector<8x8xf32>
    %cst_29 = arith.constant 0.176776692 : f32
    %116 = vector.broadcast %cst_29 : f32 to vector<8x8xf32>
    %117 = arith.mulf %115, %116 : vector<8x8xf32>
    %cst_30 = arith.constant -1.000000e+30 : f32
    %118 = vector.broadcast %cst_30 : f32 to vector<8x8xf32>
    %119 = arith.select %27, %117, %118 : vector<8x8xi1>, vector<8x8xf32>
    %cst_31 = arith.constant dense<0xFF800000> : vector<8xf32>
    %120 = vector.multi_reduction <maximumf>, %119, %cst_31 [1] : vector<8x8xf32> to vector<8xf32>
    %121 = vector.shape_cast %120 : vector<8xf32> to vector<8x1xf32>
    %122 = vector.broadcast %121 : vector<8x1xf32> to vector<8x8xf32>
    %123 = arith.subf %119, %122 : vector<8x8xf32>
    %124 = math.exp %123 : vector<8x8xf32>
    %cst_32 = arith.constant dense<0.000000e+00> : vector<8xf32>
    %125 = vector.multi_reduction <add>, %124, %cst_32 [1] : vector<8x8xf32> to vector<8xf32>
    %126 = vector.shape_cast %125 : vector<8xf32> to vector<8x1xf32>
    %127 = tpu.reciprocal %126 {approx = true} : vector<8x1xf32> -> vector<8x1xf32>
    %128 = vector.broadcast %127 : vector<8x1xf32> to vector<8x8xf32>
    %129 = arith.mulf %124, %128 : vector<8x8xf32>
    %cst_33 = arith.constant dense<0.000000e+00> : vector<8x32xf32>
    %130 = tpu.matmul %129, %49, %cst_33 {dimension_numbers = #tpu.dot_dimension_numbers<[1], [0], [0], [1], [0, 0, 1, 1], [], []>} : vector<8x8xf32>, vector<8x32xf32>, vector<8x32xf32> -> vector<8x32xf32>
    %131 = vector.extract_strided_slice %20 {offsets = [0, 96], sizes = [8, 32], strides = [1, 1]} : vector<8x128xf32> to vector<8x32xf32>
    %132 = vector.extract_strided_slice %131 {offsets = [0, 0], sizes = [8, 16], strides = [1, 1]} : vector<8x32xf32> to vector<8x16xf32>
    %133 = vector.extract_strided_slice %131 {offsets = [0, 16], sizes = [8, 16], strides = [1, 1]} : vector<8x32xf32> to vector<8x16xf32>
    %134 = arith.mulf %132, %23 : vector<8x16xf32>
    %135 = arith.mulf %133, %24 : vector<8x16xf32>
    %136 = arith.subf %134, %135 : vector<8x16xf32>
    %137 = arith.mulf %133, %23 : vector<8x16xf32>
    %138 = arith.mulf %132, %24 : vector<8x16xf32>
    %139 = arith.addf %137, %138 : vector<8x16xf32>
    %140 = tpu.concatenate %136, %139 in 1 : vector<8x16xf32>, vector<8x16xf32> -> vector<8x32xf32>
    %141 = tpu.transpose %47, [1, 0] : vector<8x32xf32> -> vector<32x8xf32>
    %cst_34 = arith.constant dense<0.000000e+00> : vector<8x8xf32>
    %142 = tpu.matmul %140, %141, %cst_34 {dimension_numbers = #tpu.dot_dimension_numbers<[1], [0], [0], [1], [0, 0, 1, 1], [], []>} : vector<8x32xf32>, vector<32x8xf32>, vector<8x8xf32> -> vector<8x8xf32>
    %cst_35 = arith.constant 0.176776692 : f32
    %143 = vector.broadcast %cst_35 : f32 to vector<8x8xf32>
    %144 = arith.mulf %142, %143 : vector<8x8xf32>
    %cst_36 = arith.constant -1.000000e+30 : f32
    %145 = vector.broadcast %cst_36 : f32 to vector<8x8xf32>
    %146 = arith.select %27, %144, %145 : vector<8x8xi1>, vector<8x8xf32>
    %cst_37 = arith.constant dense<0xFF800000> : vector<8xf32>
    %147 = vector.multi_reduction <maximumf>, %146, %cst_37 [1] : vector<8x8xf32> to vector<8xf32>
    %148 = vector.shape_cast %147 : vector<8xf32> to vector<8x1xf32>
    %149 = vector.broadcast %148 : vector<8x1xf32> to vector<8x8xf32>
    %150 = arith.subf %146, %149 : vector<8x8xf32>
    %151 = math.exp %150 : vector<8x8xf32>
    %cst_38 = arith.constant dense<0.000000e+00> : vector<8xf32>
    %152 = vector.multi_reduction <add>, %151, %cst_38 [1] : vector<8x8xf32> to vector<8xf32>
    %153 = vector.shape_cast %152 : vector<8xf32> to vector<8x1xf32>
    %154 = tpu.reciprocal %153 {approx = true} : vector<8x1xf32> -> vector<8x1xf32>
    %155 = vector.broadcast %154 : vector<8x1xf32> to vector<8x8xf32>
    %156 = arith.mulf %151, %155 : vector<8x8xf32>
    %cst_39 = arith.constant dense<0.000000e+00> : vector<8x32xf32>
    %157 = tpu.matmul %156, %49, %cst_39 {dimension_numbers = #tpu.dot_dimension_numbers<[1], [0], [0], [1], [0, 0, 1, 1], [], []>} : vector<8x8xf32>, vector<8x32xf32>, vector<8x32xf32> -> vector<8x32xf32>
    %158 = tpu.concatenate %76, %103, %130, %157 in 1 : vector<8x32xf32>, vector<8x32xf32>, vector<8x32xf32>, vector<8x32xf32> -> vector<8x128xf32>
    %159 = arith.truncf %158 : vector<8x128xf32> to vector<8x128xbf16>
    %c0_40 = arith.constant 0 : index
    %c0_41 = arith.constant 0 : index
    %160 = vector.load %arg6[%c0_40, %c0_41] : memref<128x128xbf16, #tpu.memory_space<vmem>>, vector<128x128xbf16>
    %cst_42 = arith.constant dense<0.000000e+00> : vector<8x128xf32>
    %161 = tpu.matmul %159, %160, %cst_42 {dimension_numbers = #tpu.dot_dimension_numbers<[1], [0], [0], [1], [0, 0, 1, 1], [], []>} : vector<8x128xbf16>, vector<128x128xbf16>, vector<8x128xf32> -> vector<8x128xf32>
    %c0_43 = arith.constant 0 : index
    %c0_44 = arith.constant 0 : index
    %162 = vector.load %arg7[%c0_43, %c0_44] : memref<8x128xf32, #tpu.memory_space<vmem>>, vector<8x128xf32>
    tpu.vector_store %arg7[%c0_43, %c0_44], %161 {strides = array<i32>} : memref<8x128xf32, #tpu.memory_space<vmem>>, vector<8x128xf32>,
    return
  }
}

module attributes {stable_mosaic.version = 11 : i64} {
  func.func @_moe_block_kernel(%arg0: memref<8x128xf32, #tpu.memory_space<vmem>>, %arg1: memref<8x128xf32, #tpu.memory_space<vmem>>, %arg2: memref<1x128xf32, #tpu.memory_space<vmem>>, %arg3: memref<128x128xbf16, #tpu.memory_space<vmem>>, %arg4: memref<128x2048xbf16, #tpu.memory_space<vmem>>, %arg5: memref<4x256x128xbf16, #tpu.memory_space<vmem>>, %arg6: memref<8x128xf32, #tpu.memory_space<vmem>>, %arg7: memref<8x128xf32, #tpu.memory_space<vmem>>) attributes {dimension_semantics = [], scalar_prefetch = 0 : i64, scratch_operands = 0 : i64, tpu.core_type = #tpu.core_type<tc>} {
    %c0 = arith.constant 0 : index
    %c0_0 = arith.constant 0 : index
    %0 = vector.load %arg0[%c0, %c0_0] : memref<8x128xf32, #tpu.memory_space<vmem>>, vector<8x128xf32>
    %c0_1 = arith.constant 0 : index
    %c0_2 = arith.constant 0 : index
    %1 = vector.load %arg1[%c0_1, %c0_2] : memref<8x128xf32, #tpu.memory_space<vmem>>, vector<8x128xf32>
    %2 = arith.addf %0, %1 : vector<8x128xf32>
    %c0_3 = arith.constant 0 : index
    %c0_4 = arith.constant 0 : index
    %3 = vector.load %arg7[%c0_3, %c0_4] : memref<8x128xf32, #tpu.memory_space<vmem>>, vector<8x128xf32>
    tpu.vector_store %arg7[%c0_3, %c0_4], %2 {strides = array<i32>} : memref<8x128xf32, #tpu.memory_space<vmem>>, vector<8x128xf32>,
    %4 = arith.mulf %2, %2 : vector<8x128xf32>
    %cst = arith.constant dense<0.000000e+00> : vector<8xf32>
    %5 = vector.multi_reduction <add>, %4, %cst [1] : vector<8x128xf32> to vector<8xf32>
    %6 = vector.shape_cast %5 : vector<8xf32> to vector<8x1xf32>
    %cst_5 = arith.constant 1.280000e+02 : f32
    %7 = vector.broadcast %cst_5 : f32 to vector<8x1xf32>
    %8 = arith.divf %6, %7 : vector<8x1xf32>
    %cst_6 = arith.constant 9.99999974E-6 : f32
    %9 = vector.broadcast %cst_6 : f32 to vector<8x1xf32>
    %10 = arith.addf %8, %9 : vector<8x1xf32>
    %11 = math.rsqrt %10 : vector<8x1xf32>
    %12 = vector.broadcast %11 : vector<8x1xf32> to vector<8x128xf32>
    %13 = arith.mulf %2, %12 : vector<8x128xf32>
    %c0_7 = arith.constant 0 : index
    %c0_8 = arith.constant 0 : index
    %14 = vector.load %arg2[%c0_7, %c0_8] : memref<1x128xf32, #tpu.memory_space<vmem>>, vector<1x128xf32>
    %15 = vector.broadcast %14 : vector<1x128xf32> to vector<8x128xf32>
    %16 = arith.mulf %13, %15 : vector<8x128xf32>
    %17 = arith.truncf %16 : vector<8x128xf32> to vector<8x128xbf16>
    %c0_9 = arith.constant 0 : index
    %c0_10 = arith.constant 0 : index
    %18 = vector.load %arg3[%c0_9, %c0_10] : memref<128x128xbf16, #tpu.memory_space<vmem>>, vector<128x128xbf16>
    %cst_11 = arith.constant dense<0.000000e+00> : vector<8x128xf32>
    %19 = tpu.matmul %17, %18, %cst_11 {dimension_numbers = #tpu.dot_dimension_numbers<[1], [0], [0], [1], [0, 0, 1, 1], [], []>} : vector<8x128xbf16>, vector<128x128xbf16>, vector<8x128xf32> -> vector<8x128xf32>
    %20 = tpu.iota {dimensions = array<i32: 1>} : vector<8x128xi32>
    %c4_i32 = arith.constant 4 : i32
    %21 = vector.broadcast %c4_i32 : i32 to vector<8x128xi32>
    %22 = arith.cmpi slt, %20, %21 : vector<8x128xi32>
    %cst_12 = arith.constant -1.000000e+30 : f32
    %23 = vector.broadcast %cst_12 : f32 to vector<8x128xf32>
    %24 = arith.select %22, %19, %23 : vector<8x128xi1>, vector<8x128xf32>
    %cst_13 = arith.constant dense<0xFF800000> : vector<8xf32>
    %25 = vector.multi_reduction <maximumf>, %24, %cst_13 [1] : vector<8x128xf32> to vector<8xf32>
    %26 = vector.shape_cast %25 : vector<8xf32> to vector<8x1xf32>
    %27 = vector.broadcast %26 : vector<8x1xf32> to vector<8x128xf32>
    %28 = arith.subf %24, %27 : vector<8x128xf32>
    %29 = math.exp %28 : vector<8x128xf32>
    %cst_14 = arith.constant dense<0.000000e+00> : vector<8xf32>
    %30 = vector.multi_reduction <add>, %29, %cst_14 [1] : vector<8x128xf32> to vector<8xf32>
    %31 = vector.shape_cast %30 : vector<8xf32> to vector<8x1xf32>
    %32 = tpu.reciprocal %31 {approx = true} : vector<8x1xf32> -> vector<8x1xf32>
    %33 = vector.broadcast %32 : vector<8x1xf32> to vector<8x128xf32>
    %34 = arith.mulf %29, %33 : vector<8x128xf32>
    %cst_15 = arith.constant dense<0xFF800000> : vector<8xf32>
    %35 = vector.multi_reduction <maximumf>, %34, %cst_15 [1] : vector<8x128xf32> to vector<8xf32>
    %36 = vector.shape_cast %35 : vector<8xf32> to vector<8x1xf32>
    %37 = vector.broadcast %36 : vector<8x1xf32> to vector<8x128xf32>
    %38 = arith.cmpf oge, %34, %37 : vector<8x128xf32>
    %cst_16 = arith.constant -1.000000e+00 : f32
    %39 = vector.broadcast %cst_16 : f32 to vector<8x128xf32>
    %40 = arith.select %38, %39, %34 : vector<8x128xi1>, vector<8x128xf32>
    %cst_17 = arith.constant dense<0xFF800000> : vector<8xf32>
    %41 = vector.multi_reduction <maximumf>, %40, %cst_17 [1] : vector<8x128xf32> to vector<8xf32>
    %42 = vector.shape_cast %41 : vector<8xf32> to vector<8x1xf32>
    %43 = vector.broadcast %42 : vector<8x1xf32> to vector<8x128xf32>
    %44 = arith.cmpf oge, %34, %43 : vector<8x128xf32>
    %cst_18 = arith.constant 0.000000e+00 : f32
    %45 = vector.broadcast %cst_18 : f32 to vector<8x128xf32>
    %46 = arith.select %44, %34, %45 : vector<8x128xi1>, vector<8x128xf32>
    %cst_19 = arith.constant dense<0.000000e+00> : vector<8xf32>
    %47 = vector.multi_reduction <add>, %46, %cst_19 [1] : vector<8x128xf32> to vector<8xf32>
    %48 = vector.shape_cast %47 : vector<8xf32> to vector<8x1xf32>
    %49 = tpu.reciprocal %48 {approx = true} : vector<8x1xf32> -> vector<8x1xf32>
    %50 = vector.broadcast %49 : vector<8x1xf32> to vector<8x128xf32>
    %51 = arith.mulf %46, %50 : vector<8x128xf32>
    %c0_20 = arith.constant 0 : index
    %c0_21 = arith.constant 0 : index
    %52 = vector.load %arg4[%c0_20, %c0_21] : memref<128x2048xbf16, #tpu.memory_space<vmem>>, vector<128x2048xbf16>
    %cst_22 = arith.constant dense<0.000000e+00> : vector<8x2048xf32>
    %53 = tpu.matmul %17, %52, %cst_22 {dimension_numbers = #tpu.dot_dimension_numbers<[1], [0], [0], [1], [0, 0, 1, 1], [], []>} : vector<8x128xbf16>, vector<128x2048xbf16>, vector<8x2048xf32> -> vector<8x2048xf32>
    %cst_23 = arith.constant 0.000000e+00 : f32
    %54 = vector.broadcast %cst_23 : f32 to vector<8x128xf32>
    %55 = vector.extract_strided_slice %53 {offsets = [0, 0], sizes = [8, 256], strides = [1, 1]} : vector<8x2048xf32> to vector<8x256xf32>
    %56 = vector.extract_strided_slice %53 {offsets = [0, 256], sizes = [8, 256], strides = [1, 1]} : vector<8x2048xf32> to vector<8x256xf32>
    %57 = arith.negf %55 : vector<8x256xf32>
    %58 = math.exp %57 : vector<8x256xf32>
    %cst_24 = arith.constant 1.000000e+00 : f32
    %59 = vector.broadcast %cst_24 : f32 to vector<8x256xf32>
    %60 = arith.addf %59, %58 : vector<8x256xf32>
    %61 = arith.divf %59, %60 : vector<8x256xf32>
    %62 = arith.mulf %55, %61 : vector<8x256xf32>
    %63 = arith.mulf %62, %56 : vector<8x256xf32>
    %64 = arith.truncf %63 : vector<8x256xf32> to vector<8x256xbf16>
    %c0_25 = arith.constant 0 : index
    %c0_26 = arith.constant 0 : index
    %c0_27 = arith.constant 0 : index
    %65 = vector.load %arg5[%c0_25, %c0_26, %c0_27] : memref<4x256x128xbf16, #tpu.memory_space<vmem>>, vector<1x256x128xbf16>
    %66 = vector.shape_cast %65 : vector<1x256x128xbf16> to vector<256x128xbf16>
    %cst_28 = arith.constant dense<0.000000e+00> : vector<8x128xf32>
    %67 = tpu.matmul %64, %66, %cst_28 {dimension_numbers = #tpu.dot_dimension_numbers<[1], [0], [0], [1], [0, 0, 1, 1], [], []>} : vector<8x256xbf16>, vector<256x128xbf16>, vector<8x128xf32> -> vector<8x128xf32>
    %68 = vector.extract_strided_slice %51 {offsets = [0, 0], sizes = [8, 1], strides = [1, 1]} : vector<8x128xf32> to vector<8x1xf32>
    %69 = vector.broadcast %68 : vector<8x1xf32> to vector<8x128xf32>
    %70 = arith.mulf %69, %67 : vector<8x128xf32>
    %71 = arith.addf %54, %70 : vector<8x128xf32>
    %72 = vector.extract_strided_slice %53 {offsets = [0, 512], sizes = [8, 256], strides = [1, 1]} : vector<8x2048xf32> to vector<8x256xf32>
    %73 = vector.extract_strided_slice %53 {offsets = [0, 768], sizes = [8, 256], strides = [1, 1]} : vector<8x2048xf32> to vector<8x256xf32>
    %74 = arith.negf %72 : vector<8x256xf32>
    %75 = math.exp %74 : vector<8x256xf32>
    %cst_29 = arith.constant 1.000000e+00 : f32
    %76 = vector.broadcast %cst_29 : f32 to vector<8x256xf32>
    %77 = arith.addf %76, %75 : vector<8x256xf32>
    %78 = arith.divf %76, %77 : vector<8x256xf32>
    %79 = arith.mulf %72, %78 : vector<8x256xf32>
    %80 = arith.mulf %79, %73 : vector<8x256xf32>
    %81 = arith.truncf %80 : vector<8x256xf32> to vector<8x256xbf16>
    %c1 = arith.constant 1 : index
    %c0_30 = arith.constant 0 : index
    %c0_31 = arith.constant 0 : index
    %82 = vector.load %arg5[%c1, %c0_30, %c0_31] : memref<4x256x128xbf16, #tpu.memory_space<vmem>>, vector<1x256x128xbf16>
    %83 = vector.shape_cast %82 : vector<1x256x128xbf16> to vector<256x128xbf16>
    %cst_32 = arith.constant dense<0.000000e+00> : vector<8x128xf32>
    %84 = tpu.matmul %81, %83, %cst_32 {dimension_numbers = #tpu.dot_dimension_numbers<[1], [0], [0], [1], [0, 0, 1, 1], [], []>} : vector<8x256xbf16>, vector<256x128xbf16>, vector<8x128xf32> -> vector<8x128xf32>
    %85 = vector.extract_strided_slice %51 {offsets = [0, 1], sizes = [8, 1], strides = [1, 1]} : vector<8x128xf32> to vector<8x1xf32>
    %86 = vector.broadcast %85 : vector<8x1xf32> to vector<8x128xf32>
    %87 = arith.mulf %86, %84 : vector<8x128xf32>
    %88 = arith.addf %71, %87 : vector<8x128xf32>
    %89 = vector.extract_strided_slice %53 {offsets = [0, 1024], sizes = [8, 256], strides = [1, 1]} : vector<8x2048xf32> to vector<8x256xf32>
    %90 = vector.extract_strided_slice %53 {offsets = [0, 1280], sizes = [8, 256], strides = [1, 1]} : vector<8x2048xf32> to vector<8x256xf32>
    %91 = arith.negf %89 : vector<8x256xf32>
    %92 = math.exp %91 : vector<8x256xf32>
    %cst_33 = arith.constant 1.000000e+00 : f32
    %93 = vector.broadcast %cst_33 : f32 to vector<8x256xf32>
    %94 = arith.addf %93, %92 : vector<8x256xf32>
    %95 = arith.divf %93, %94 : vector<8x256xf32>
    %96 = arith.mulf %89, %95 : vector<8x256xf32>
    %97 = arith.mulf %96, %90 : vector<8x256xf32>
    %98 = arith.truncf %97 : vector<8x256xf32> to vector<8x256xbf16>
    %c2 = arith.constant 2 : index
    %c0_34 = arith.constant 0 : index
    %c0_35 = arith.constant 0 : index
    %99 = vector.load %arg5[%c2, %c0_34, %c0_35] : memref<4x256x128xbf16, #tpu.memory_space<vmem>>, vector<1x256x128xbf16>
    %100 = vector.shape_cast %99 : vector<1x256x128xbf16> to vector<256x128xbf16>
    %cst_36 = arith.constant dense<0.000000e+00> : vector<8x128xf32>
    %101 = tpu.matmul %98, %100, %cst_36 {dimension_numbers = #tpu.dot_dimension_numbers<[1], [0], [0], [1], [0, 0, 1, 1], [], []>} : vector<8x256xbf16>, vector<256x128xbf16>, vector<8x128xf32> -> vector<8x128xf32>
    %102 = vector.extract_strided_slice %51 {offsets = [0, 2], sizes = [8, 1], strides = [1, 1]} : vector<8x128xf32> to vector<8x1xf32>
    %103 = vector.broadcast %102 : vector<8x1xf32> to vector<8x128xf32>
    %104 = arith.mulf %103, %101 : vector<8x128xf32>
    %105 = arith.addf %88, %104 : vector<8x128xf32>
    %106 = vector.extract_strided_slice %53 {offsets = [0, 1536], sizes = [8, 256], strides = [1, 1]} : vector<8x2048xf32> to vector<8x256xf32>
    %107 = vector.extract_strided_slice %53 {offsets = [0, 1792], sizes = [8, 256], strides = [1, 1]} : vector<8x2048xf32> to vector<8x256xf32>
    %108 = arith.negf %106 : vector<8x256xf32>
    %109 = math.exp %108 : vector<8x256xf32>
    %cst_37 = arith.constant 1.000000e+00 : f32
    %110 = vector.broadcast %cst_37 : f32 to vector<8x256xf32>
    %111 = arith.addf %110, %109 : vector<8x256xf32>
    %112 = arith.divf %110, %111 : vector<8x256xf32>
    %113 = arith.mulf %106, %112 : vector<8x256xf32>
    %114 = arith.mulf %113, %107 : vector<8x256xf32>
    %115 = arith.truncf %114 : vector<8x256xf32> to vector<8x256xbf16>
    %c3 = arith.constant 3 : index
    %c0_38 = arith.constant 0 : index
    %c0_39 = arith.constant 0 : index
    %116 = vector.load %arg5[%c3, %c0_38, %c0_39] : memref<4x256x128xbf16, #tpu.memory_space<vmem>>, vector<1x256x128xbf16>
    %117 = vector.shape_cast %116 : vector<1x256x128xbf16> to vector<256x128xbf16>
    %cst_40 = arith.constant dense<0.000000e+00> : vector<8x128xf32>
    %118 = tpu.matmul %115, %117, %cst_40 {dimension_numbers = #tpu.dot_dimension_numbers<[1], [0], [0], [1], [0, 0, 1, 1], [], []>} : vector<8x256xbf16>, vector<256x128xbf16>, vector<8x128xf32> -> vector<8x128xf32>
    %119 = vector.extract_strided_slice %51 {offsets = [0, 3], sizes = [8, 1], strides = [1, 1]} : vector<8x128xf32> to vector<8x1xf32>
    %120 = vector.broadcast %119 : vector<8x1xf32> to vector<8x128xf32>
    %121 = arith.mulf %120, %118 : vector<8x128xf32>
    %122 = arith.addf %105, %121 : vector<8x128xf32>
    %c0_41 = arith.constant 0 : index
    %c0_42 = arith.constant 0 : index
    %123 = vector.load %arg6[%c0_41, %c0_42] : memref<8x128xf32, #tpu.memory_space<vmem>>, vector<8x128xf32>
    tpu.vector_store %arg6[%c0_41, %c0_42], %122 {strides = array<i32>} : memref<8x128xf32, #tpu.memory_space<vmem>>, vector<8x128xf32>,
    return
  }
}

</mosaic_0001>

<bundles_post_ra>
// kernel: mixtral_decoder_layer.2
= control target key start
LH: loop header
LB: loop body
LE: loop exit
PB: predicated region body
PF: predicated region fallthrough
CT: control target
= control target key end

     0   :  { %14 = vsyncpa [#allocation3], 0  ;;  %s1672_s0 = inlined_call_operand.vmem [shape: f32[8,128], index: 0, kind: input, shape index: {}]   ;;  %s1673_s1 = inlined_call_operand.vmem [shape: f32[8,128], index: 1, kind: input, shape index: {}]   ;;  %s1674_s2 = inlined_call_operand.vmem [shape: f32[1,128], index: 2, kind: input, shape index: {}]   ;;  %s1675_s3 = inlined_call_operand.vmem [shape: f32[8,16], index: 3, kind: input, shape index: {}]   ;;  %s1676_s4 = inlined_call_operand.vmem [shape: f32[8,16], index: 4, kind: input, shape index: {}]   ;;  %s1677_s5 = inlined_call_operand.hbm [shape: bf16[128,256], index: 5, kind: input, shape index: {}]   ;;  %s1678_s6 = inlined_call_operand.hbm [shape: bf16[128,128], index: 6, kind: input, shape index: {}]   ;;  %s1679_s7 = inlined_call_operand.vmem [shape: f32[8,128], index: 7, kind: output, shape index: {0}]   ;;  %s1680_s8 = inlined_call_operand.vmem [shape: f32[8,128], index: 8, kind: output, shape index: {1}]  }
   0x1   :  { %15 = vsyncpa [#allocation5], 0  ;;  %s1404_s27 = smov [#allocation2]  }
   0x2   :  { %s31_s28 = sshll.u32 %s1404_s27, 4  ;;  %s32_s28 = int_to_ptr.vmem [resolvable:$true] %s31_s28 }
   0x3   :  { %s1368_s29 = scalar_lea.vmem %s32_s28, 2048  ;;  %p1373_p1 = scmp.lt.s32.totalorder %s32_s28, %s32_s28 }
   0x4   :  { %p1369_p0 = scmp.ne.s32.totalorder %s32_s28, %s1368_s29  ;;  %p1374_p2 = scmp.lt.s32.totalorder %s1368_s29, %s1368_s29 }
   0x6   :  { %p1375_p3 = por %p1374_p2, %p1373_p1 }
   0x8   :  { %p1376_p4 = pnand %p1375_p3, %p1369_p0 }
   0xa   :  { %1379 = shalt.err (!%p1376_p4)
}
   0xb   :  { %s1405_s30 = smov 128   ;;  %s1406_s9 = smov 8  }
   0xc   :  { %37 = dma.hbm_to_vmem [thread:$0]  %s1677_s5, 2048, %s32_s28, [#allocation3], %s1405_s30, %s1405_s30, %s1406_s9  }
   0xd   :  { %s1407_s12 = smov [#allocation4]  }
   0xe   :  { %s43_s13 = sshll.u32 %s1407_s12, 4  ;;  %s44_s13 = int_to_ptr.vmem [resolvable:$true] %s43_s13 }
   0xf   :  { %s1388_s14 = scalar_lea.vmem %s44_s13, 1024  ;;  %p1393_p6 = scmp.lt.s32.totalorder %s44_s13, %s44_s13 }
  0x10   :  { %p1389_p5 = scmp.ne.s32.totalorder %s44_s13, %s1388_s14  ;;  %p1394_p7 = scmp.lt.s32.totalorder %s1388_s14, %s1388_s14 }
  0x12   :  { %p1395_p8 = por %p1394_p7, %p1393_p6 }
  0x14   :  { %p1396_p9 = pnand %p1395_p8, %p1389_p5 }
  0x16   :  { %1399 = shalt.err (!%p1396_p9)
}
  0x17   :  { %s1408_s15 = smov 64   ;;  %s1409_s16 = smov 4  }
  0x18   :  { %49 = dma.hbm_to_vmem [thread:$0]  %s1678_s6, 1024, %s44_s13, [#allocation5], %s1408_s15, %s1408_s15, %s1409_s16  }
  0x19   :  { %1400 = dma.done.wait [#allocation3], 2048  }
  0x1a   :  { %1401 = vsyncadd [#allocation3], 4294965248 }
  0x1b   :  { %1402 = dma.done.wait [#allocation5], 1024  }
  0x1c   :  { %1403 = vsyncadd [#allocation5], 4294966272  ;;  %v57_v0 = vld [vmem:[%s1672_s0] sm:$0xff]  ;;  %v1310_v3 = vld [vmem:[#allocation2 + $0x74] ss:$8 sps:$4 sm:$0xff]   ;;  %v1410_v15 = vmov 0   ;;  %v217_v60 = vlaneseq }
  0x1d   :  { %v58_v1 = vld [vmem:[%s1673_s1] sm:$0xff]  ;;  %v1312_v4 = vld [vmem:[#allocation2 + $0x70] ss:$8 sps:$4 sm:$0xff]   ;;  %174 = vmatprep.subr.bf16.mxu0 %v1310_v3  ;;  %v1316_v8 = vld [vmem:[#allocation2 + $0x54] ss:$8 sps:$4 sm:$0xff]   ;;  %206 = vmatprep.mubr.bf16.mxu0 %v1410_v15  ;;  %s1411_s24 = smov 16  }
  0x1e   :  { %v59_v2 = vadd.f32 %v58_v1, %v57_v0  ;;  %v1313_v5 = vld [vmem:[#allocation2 + $0x64] ss:$8 sps:$4 sm:$0xff]   ;;  %v1315_v7 = vld [vmem:[#allocation2 + $0x60] ss:$8 sps:$4 sm:$0xff]   ;;  %175 = vmatpush1.bf16.msra.mxu0 %v1312_v4  ;;  %v1318_v9 = vld [vmem:[#allocation2 + $0x50] ss:$8 sps:$4 sm:$0xff]  }
  0x1f   :  { %176 = vmatprep.subr.bf16.mxu0 %v1313_v5  ;;  %v1319_v10 = vld [vmem:[#allocation2 + $0x44] ss:$8 sps:$4 sm:$0xff]   ;;  %v1321_v11 = vld [vmem:[#allocation2 + $0x40] ss:$8 sps:$4 sm:$0xff]   ;;  %v1322_v12 = vld [vmem:[#allocation2 + $0x34] ss:$8 sps:$4 sm:$0xff]  }
  0x20   :  { %v61_v6 = vmul.f32 %v59_v2, %v59_v2  ;;  %60 = vst [vmem:[%s1680_s8] sm:$0xff] %v59_v2  ;;  %v1324_v13 = vld [vmem:[#allocation2 + $0x30] ss:$8 sps:$4 sm:$0xff]   ;;  %v1325_v14 = vld [vmem:[#allocation2 + $0x24] ss:$8 sps:$4 sm:$0xff]   ;;  %v1327_v16 = vld [vmem:[#allocation2 + $0x20] ss:$8 sps:$4 sm:$0xff]  }
  0x21   :  { %v1328_v17 = vld [vmem:[#allocation2 + $0x14] ss:$8 sps:$4 sm:$0xff]   ;;  %v1330_v18 = vld [vmem:[#allocation2 + $0x10] ss:$8 sps:$4 sm:$0xff]   ;;  %v1331_v19 = vld [vmem:[#allocation2 + $0x4] ss:$8 sps:$4 sm:$0xff]  }
  0x22   :  { %62 = vadd.xlane.f32.xlu0 %v61_v6  ;;  %177 = vmatpush1.bf16.msra.mxu0 %v1315_v7  ;;  %v1333_v20 = vld [vmem:[#allocation2] ss:$8 sps:$4 sm:$0xff]   ;;  %v1412_v32 = vmov 0.0   ;;  %vm1414_vm0 = vmmov 0   ;;  %s1416_s26 = smov 32   ;;  %vm244_vm1 = vcmask 130048  }
  0x23   :  { %178 = vmatprep.subr.bf16.mxu0 %v1316_v8  ;;  %v1484_v21 = vld [vmem:[%s1675_s3] sm:$0xff]  ;;  %1235 = vmatprep.subr.mxu1 %v1412_v32  ;;  %vm296_vm2 = vcmask 261120   ;;  %v1544_v61 = vshrl.u32 %v217_v60, 7  ;;  %v1546_v62 = vand.u32 127, %v217_v60  ;;  %vm375_vm4 = vcmask 64512   ;;  %s1417_s27 = smov 96  }
  0x24   :  { %v1489_v22 = vld [vmem:[%s1676_s4] sm:$0xff]  ;;  %234 = vrot.lane.b32.xlu1 %v1484_v21, %s1411_s24  ;;  %s1413_s4 = smov 112   ;;  %1237 = vmatprep.mubr.msk.f32.mxu1 %vm1414_vm0, %v1412_v32  ;;  %s1418_s28 = smov 80   ;;  %vm1053_vm5 = vcmask 523264   ;;  %vm1055_vm6 = vcmask 785408  }
  0x25   :  { %v1173_v27 = vld [vmem:[%s1674_s2] ss:$0 sm:$0xff]  ;;  %s1415_s2 = smov 48   ;;  %vm221_vm3 = vcmp.le.s32.totalorder %v1546_v62, %v1544_v61  ;;  %v1334_v62 = vld [vmem:[#allocation4 + $0x38] sm:$0xff]  }
  0x26   :  { %179 = vmatpush1.bf16.msra.mxu0 %v1318_v9 }
  0x27   :  { %180 = vmatprep.subr.bf16.mxu0 %v1319_v10 }
  0x2a   :  { %181 = vmatpush1.bf16.msra.mxu0 %v1321_v11 }
  0x2b   :  { %182 = vmatprep.subr.bf16.mxu0 %v1322_v12 }
  0x2e   :  { %183 = vmatpush1.bf16.msra.mxu0 %v1324_v13 }
  0x2f   :  { %184 = vmatprep.subr.bf16.mxu0 %v1325_v14 }
  0x32   :  { %185 = vmatpush1.bf16.msra.mxu0 %v1327_v16 }
  0x33   :  { %186 = vmatprep.subr.bf16.mxu0 %v1328_v17 }
  0x36   :  { %187 = vmatpush1.bf16.msra.mxu0 %v1330_v18 }
  0x37   :  { %188 = vmatprep.subr.bf16.mxu0 %v1331_v19 }
  0x38   :  { %224 = vrot.lane.b32.xlu0 %v1489_v22, %s1411_s24 }
  0x3a   :  { %189 = vmatpush1.bf16.msra.mxu0 %v1333_v20 }
  0x3b   :  { %1275 = vmatprep.subr.bf16.mxu0 %v1412_v32 }
  0x96   :  { %v235_v41 = vpop.permute.xlu1 %234 }
  0xab   :  { %v63_v23 = vpop.xlane.xlu0 %62 }
  0xac   :  { %v65_v24 = vmul.f32 0.0078125, %v63_v23 }
  0xae   :  { %v66_v25 = vadd.f32 1e-05, %v65_v24 }
  0xaf   :  { %v225_v31 = vpop.permute.xlu0 %224 }
  0xb0   :  { %1342 = vrsqrt.f32 %v66_v25 }
  0xbd   :  { %v1343_v26 = vpop.eup %1342 }
  0xbe   :  { %v68_v28 = vmul.f32 %v1343_v26, %v59_v2 }
  0xc0   :  { %v76_v29 = vmul.f32 %v1173_v27, %v68_v28 }
  0xc2   :  { %v77_v30 = vpack.c.bf16 %v76_v29, %v76_v29 }
  0xc4   :  { %207 = vmatmul.mubr.bf16.vlgmr.msra.gmra.mxu0 %v77_v30 }
  0xc5   :  { %1291 = vmatprep.mubr.msk.bf16.mxu0 %vm1414_vm0, %v1412_v32  ;;  %1276 = vmatpush3.bf16.msra.mxu0 %v1334_v62 }
  0xc6   :  { %1277 = vmatprep.subr.bf16.mxu0 %v1412_v32 }
 0x184   :  { %v1500_v33 = vpop.f32.mrf.mxu0 }
 0x185   :  { %v282_v34 = vmul.f32 %v225_v31, %v1500_v33  ;;  %v289_v40 = vmul.f32 %v1489_v22, %v1500_v33  ;;  %v281_v49 = vmul.f32 %v1484_v21, %v1500_v33  ;;  %v288_v51 = vmul.f32 %v235_v41, %v1500_v33 }
 0x186   :  { %v1503_v35 = vpop.f32.mrf.mxu0 }
 0x187   :  { %284 = vrot.lane.b32.xlu1 %v282_v34, %s1413_s4  ;;  %v227_v37 = vmul.f32 %v225_v31, %v1503_v35  ;;  %v238_v39 = vmul.f32 %v1489_v22, %v1503_v35  ;;  %v222_v44 = vmul.f32 %v1484_v21, %v1503_v35  ;;  %v237_v45 = vmul.f32 %v235_v41, %v1503_v35 }
 0x188   :  { %v212_v36 = vpop.f32.mrf.mxu0 }
 0x18a   :  { %v213_v38 = vpop.f32.mrf.mxu0 }
 0x18b   :  { %229 = vrot.lane.b32.xlu1 %v227_v37, %s1413_s4 }
 0x18f   :  { %240 = vrot.lane.b32.xlu1 %v238_v39, %s1411_s24 }
 0x193   :  { %291 = vrot.lane.b32.xlu1 %v289_v40, %s1411_s24 }
 0x197   :  { %250 = vrot.lane.b32.xlu1 %v1489_v22, %s1415_s2 }
 0x19b   :  { %263 = vrot.lane.b32.xlu1 %v1489_v22, %s1416_s26 }
 0x19f   :  { %246 = vrot.lane.b32.xlu1 %v1484_v21, %s1416_s26 }
 0x1a3   :  { %259 = vrot.lane.b32.xlu1 %v1484_v21, %s1415_s2 }
 0x1f9   :  { %v285_v42 = vpop.permute.xlu1 %284 }
 0x1fa   :  { %v287_v53 = vsub.f32 %v281_v49, %v285_v42 }
 0x1fd   :  { %v230_v43 = vpop.permute.xlu1 %229 }
 0x1fe   :  { %v232_v47 = vsub.f32 %v222_v44, %v230_v43 }
 0x201   :  { %v241_v46 = vpop.permute.xlu1 %240 }
 0x202   :  { %v243_v48 = vadd.f32 %v241_v46, %v237_v45 }
 0x204   :  { %v1530_v50 = vsel %vm244_vm1, %v232_v47, %v243_v48 }
 0x205   :  { %1236 = vmatpush3.xpose.msk.msra.mxu1 %vm296_vm2, %v1530_v50  ;;  %v292_v52 = vpop.permute.xlu1 %291 }
 0x206   :  { %v294_v54 = vadd.f32 %v292_v52, %v288_v51  ;;  %1240 = vmatprep.subr.mxu1 %v1412_v32 }
 0x208   :  { %v295_v55 = vsel %vm244_vm1, %v287_v53, %v294_v54 }
 0x209   :  { %1238 = vmatmul.mubr.msk.f32.vlgmr.msra.gmra.mxu1 %vm296_vm2, %v295_v55  ;;  %v251_v56 = vpop.permute.xlu1 %250 }
 0x20a   :  { %v465_v57 = vmul.f32 %v251_v56, %v1500_v33  ;;  %1242 = vmatprep.mubr.msk.f32.mxu1 %vm1414_vm0, %v1412_v32  ;;  %v253_v18 = vmul.f32 %v251_v56, %v1503_v35 }
 0x20c   :  { %467 = vrot.lane.b32.xlu1 %v465_v57, %s1413_s4 }
 0x20d   :  { %v264_v58 = vpop.permute.xlu1 %263 }
 0x20e   :  { %v472_v59 = vmul.f32 %v264_v58, %v1500_v33  ;;  %v266_v19 = vmul.f32 %v264_v58, %v1503_v35 }
 0x210   :  { %474 = vrot.lane.b32.xlu1 %v472_v59, %s1411_s24 }
 0x211   :  { %v247_v4 = vpop.permute.xlu1 %246 }
 0x212   :  { %v464_v7 = vmul.f32 %v247_v4, %v1500_v33  ;;  %v249_v44 = vmul.f32 %v247_v4, %v1503_v35 }
 0x215   :  { %v1554_v5 = vpop.permute.xlu1 %259 }
 0x216   :  { %v471_v16 = vmul.f32 %v1554_v5, %v1500_v33  ;;  %v262_v47 = vmul.f32 %v1554_v5, %v1503_v35 }
 0x27e   :  { %v468_v6 = vpop.permute.xlu1 %467 }
 0x27f   :  { %v470_v8 = vsub.f32 %v464_v7, %v468_v6 }
 0x282   :  { %v475_v15 = vpop.permute.xlu1 %474 }
 0x283   :  { %v477_v17 = vadd.f32 %v475_v15, %v471_v16 }
 0x2c9   :  { %v369_v63 = vpop.f32.mrf.mxu1 }
 0x2ca   :  { %v373_v0 = vmul.f32 0.17677669, %v369_v63 }
 0x2cb   :  { %v1239_v1 = vpop.f32.mrf.mxu1 }
 0x2cc   :  { %v374_v2 = vsel %vm221_vm3, %v373_v0, -1e+30 }
 0x2cd   :  { %v376_v3 = vsel %vm375_vm4, %v374_v2, -inf }
 0x2ce   :  { %377 = vmax.xlane.f32.xlu0 %v376_v3 }
 0x2e4   :  { %388 = vrot.lane.b32.xlu0 %v1503_v35, %s1408_s15 }
 0x2e8   :  { %479 = vrot.lane.b32.xlu0 %v470_v8, %s1417_s27 }
 0x357   :  { %v378_v9 = vpop.xlane.xlu0 %377 }
 0x358   :  { %v379_v10 = vsub.f32 %v374_v2, %v378_v9 }
 0x35a   :  { %v380_v11 = vmul.f32 1.442695, %v379_v10 }
 0x35b   :  { %v389_v12 = vpop.permute.xlu0 %388 }
 0x35c   :  { %1344 = vpow2.f32 %v380_v11  ;;  %1241 = vmatpush3.msra.mxu1 %v389_v12 }
 0x35d   :  { %1245 = vmatprep.subr.mxu1 %v1412_v32 }
 0x35f   :  { %v480_v30 = vpop.permute.xlu0 %479 }
 0x369   :  { %v1345_v13 = vpop.eup %1344 }
 0x36a   :  { %v382_v14 = vsel %vm375_vm4, %v1345_v13, 0.0 }
 0x36b   :  { %383 = vadd.xlane.f32.xlu1 %v382_v14 }
 0x37c   :  { %483 = vrot.lane.b32.xlu1 %v477_v17, %s1417_s27 }
 0x380   :  { %650 = vrot.lane.b32.xlu1 %v1489_v22, %s1418_s28 }
 0x384   :  { %663 = vrot.lane.b32.xlu1 %v1489_v22, %s1408_s15 }
 0x388   :  { %255 = vrot.lane.b32.xlu1 %v253_v18, %s1413_s4 }
 0x38c   :  { %268 = vrot.lane.b32.xlu1 %v266_v19, %s1411_s24 }
 0x390   :  { %646 = vrot.lane.b32.xlu1 %v1484_v21, %s1408_s15 }
 0x3f4   :  { %v384_v20 = vpop.xlane.xlu1 %383 }
 0x3f5   :  { %1346 = vrcp.f32 %v384_v20 }
 0x3f8   :  { %v484_v23 = vpop.permute.xlu1 %483 }
 0x3f9   :  { %v486_v31 = vsel %vm244_vm1, %v480_v30, %v484_v23 }
 0x3fc   :  { %v651_v24 = vpop.permute.xlu1 %650 }
 0x3fd   :  { %v653_v25 = vmul.f32 %v651_v24, %v1500_v33 }
 0x3ff   :  { %655 = vrot.lane.b32.xlu1 %v653_v25, %s1413_s4 }
 0x400   :  { %v664_v26 = vpop.permute.xlu1 %663 }
 0x401   :  { %v666_v27 = vmul.f32 %v664_v26, %v1500_v33 }
 0x402   :  { %v1347_v28 = vpop.eup %1346 }
 0x403   :  { %668 = vrot.lane.b32.xlu1 %v666_v27, %s1411_s24  ;;  %v386_v29 = vmul.f32 %v1347_v28, %v1345_v13 }
 0x404   :  { %v256_v42 = vpop.permute.xlu1 %255 }
 0x405   :  { %1243 = vmatmul.mubr.msk.f32.vlgmr.msra.gmra.mxu1 %vm375_vm4, %v386_v29  ;;  %v258_v45 = vsub.f32 %v249_v44, %v256_v42 }
 0x406   :  { %1246 = vmatpush3.xpose.msk.msra.mxu1 %vm296_vm2, %v1530_v50  ;;  %1247 = vmatprep.mubr.msk.f32.mxu1 %vm1414_vm0, %v1412_v32 }
 0x407   :  { %1250 = vmatprep.subr.mxu1 %v1412_v32 }
 0x408   :  { %v269_v43 = vpop.permute.xlu1 %268 }
 0x409   :  { %1248 = vmatmul.mubr.msk.f32.vlgmr.msra.gmra.mxu1 %vm296_vm2, %v486_v31  ;;  %v271_v48 = vadd.f32 %v269_v43, %v262_v47 }
 0x40a   :  { %1251 = vmatpush3.msra.mxu1 %v389_v12  ;;  %1252 = vmatprep.mubr.msk.f32.mxu1 %vm1414_vm0, %v1412_v32 }
 0x40b   :  { %1255 = vmatprep.subr.mxu1 %v1412_v32 }
 0x40c   :  { %v647_v46 = vpop.permute.xlu1 %646 }
 0x40d   :  { %v649_v50 = vmul.f32 %v647_v46, %v1500_v33 }
 0x471   :  { %v656_v49 = vpop.permute.xlu1 %655 }
 0x472   :  { %v658_v51 = vsub.f32 %v649_v50, %v656_v49 }
 0x475   :  { %v669_v57 = vpop.permute.xlu1 %668 }
 0x4c5   :  { %v1590_v34 = vpop.f32.mrf.mxu1 }
 0x4c7   :  { %v1244_v36 = vpop.f32.mrf.mxu1 }
 0x4c9   :  { %v556_v37 = vpop.f32.mrf.mxu1 }
 0x4ca   :  { %v560_v38 = vmul.f32 0.17677669, %v556_v37 }
 0x4cb   :  { %v1249_v39 = vpop.f32.mrf.mxu1 }
 0x4cc   :  { %v561_v40 = vsel %vm221_vm3, %v560_v38, -1e+30 }
 0x4cd   :  { %v562_v41 = vsel %vm375_vm4, %v561_v40, -inf }
 0x4ce   :  { %563 = vmax.xlane.f32.xlu0 %v562_v41 }
 0x4e4   :  { %659 = vrot.lane.b32.xlu0 %v1484_v21, %s1418_s28 }
 0x4e8   :  { %273 = vrot.lane.b32.xlu0 %v258_v45, %s1417_s27 }
 0x4ec   :  { %277 = vrot.lane.b32.xlu0 %v271_v48, %s1417_s27 }
 0x4f0   :  { %673 = vrot.lane.b32.xlu0 %v658_v51, %s1408_s15 }
 0x557   :  { %v564_v52 = vpop.xlane.xlu0 %563 }
 0x558   :  { %v565_v53 = vsub.f32 %v561_v40, %v564_v52 }
 0x55a   :  { %v566_v54 = vmul.f32 1.442695, %v565_v53 }
 0x55b   :  { %v660_v55 = vpop.permute.xlu0 %659 }
 0x55c   :  { %1348 = vpow2.f32 %v566_v54  ;;  %v662_v56 = vmul.f32 %v660_v55, %v1500_v33  ;;  %v1335_v55 = vld [vmem:[#allocation4 + $0x30] sm:$0xff]  }
 0x55d   :  { %1278 = vmatpush3.bf16.msra.mxu0 %v1335_v55 }
 0x55e   :  { %v671_v58 = vadd.f32 %v669_v57, %v662_v56  ;;  %v1336_v56 = vld [vmem:[#allocation4 + $0x28] sm:$0xff]   ;;  %1279 = vmatprep.subr.bf16.mxu0 %v1412_v32  ;;  %v1337_v57 = vld [vmem:[#allocation4 + $0x20] sm:$0xff]  }
 0x55f   :  { %v274_v0 = vpop.permute.xlu0 %273 }
 0x560   :  { %677 = vrot.lane.b32.xlu0 %v671_v58, %s1408_s15  ;;  %v1338_v58 = vld [vmem:[#allocation4 + $0x18] sm:$0xff]  }
 0x561   :  { %1280 = vmatpush3.bf16.msra.mxu0 %v1336_v56 }
 0x562   :  { %1281 = vmatprep.subr.bf16.mxu0 %v1412_v32 }
 0x563   :  { %v278_v3 = vpop.permute.xlu0 %277 }
 0x564   :  { %v280_v8 = vsel %vm244_vm1, %v274_v0, %v278_v3 }
 0x565   :  { %1282 = vmatpush3.bf16.msra.mxu0 %v1337_v57 }
 0x566   :  { %1283 = vmatprep.subr.bf16.mxu0 %v1412_v32 }
 0x567   :  { %v674_v6 = vpop.permute.xlu0 %673 }
 0x569   :  { %v1349_v59 = vpop.eup %1348  ;;  %1284 = vmatpush3.bf16.msra.mxu0 %v1338_v58 }
 0x56a   :  { %v568_v60 = vsel %vm375_vm4, %v1349_v59, 0.0  ;;  %1285 = vmatprep.subr.bf16.mxu0 %v1412_v32 }
 0x56b   :  { %569 = vadd.xlane.f32.xlu1 %v568_v60  ;;  %v1340_v60 = vld [vmem:[#allocation4 + $0x8] sm:$0xff]  }
 0x57c   :  { %850 = vrot.lane.b32.xlu1 %v1489_v22, %s1413_s4 }
 0x580   :  { %863 = vrot.lane.b32.xlu1 %v1489_v22, %s1417_s27 }
 0x584   :  { %846 = vrot.lane.b32.xlu1 %v1484_v21, %s1417_s27 }
 0x5d2   :  { %v678_v9 = vpop.permute.xlu0 %677 }
 0x5d3   :  { %v680_v10 = vsel %vm244_vm1, %v674_v6, %v678_v9 }
 0x5f4   :  { %v570_v63 = vpop.xlane.xlu1 %569 }
 0x5f5   :  { %1350 = vrcp.f32 %v570_v63  ;;  %v1341_v63 = vld [vmem:[#allocation4] sm:$0xff]  }
 0x5f8   :  { %v851_v1 = vpop.permute.xlu1 %850 }
 0x5f9   :  { %v853_v2 = vmul.f32 %v851_v1, %v1500_v33 }
 0x5fb   :  { %855 = vrot.lane.b32.xlu1 %v853_v2, %s1413_s4 }
 0x5fc   :  { %v864_v4 = vpop.permute.xlu1 %863 }
 0x5fd   :  { %v866_v5 = vmul.f32 %v864_v4, %v1500_v33 }
 0x5ff   :  { %868 = vrot.lane.b32.xlu1 %v866_v5, %s1411_s24 }
 0x600   :  { %v847_v18 = vpop.permute.xlu1 %846 }
 0x601   :  { %v849_v20 = vmul.f32 %v847_v18, %v1500_v33 }
 0x602   :  { %v1351_v7 = vpop.eup %1350 }
 0x603   :  { %v572_v22 = vmul.f32 %v1351_v7, %v1349_v59  ;;  %v1339_v59 = vld [vmem:[#allocation4 + $0x10] sm:$0xff]  }
 0x604   :  { %1286 = vmatpush3.bf16.msra.mxu0 %v1339_v59 }
 0x605   :  { %1253 = vmatmul.mubr.msk.f32.vlgmr.msra.gmra.mxu1 %vm375_vm4, %v572_v22  ;;  %1287 = vmatprep.subr.bf16.mxu0 %v1412_v32 }
 0x606   :  { %1256 = vmatpush3.xpose.msk.msra.mxu1 %vm296_vm2, %v280_v8  ;;  %1257 = vmatprep.mubr.msk.f32.mxu1 %vm1414_vm0, %v1412_v32 }
 0x607   :  { %1260 = vmatprep.subr.mxu1 %v1412_v32 }
 0x608   :  { %1288 = vmatpush3.bf16.msra.mxu0 %v1340_v60 }
 0x609   :  { %1258 = vmatmul.mubr.msk.f32.vlgmr.msra.gmra.mxu1 %vm296_vm2, %v680_v10  ;;  %1289 = vmatprep.subr.bf16.mxu0 %v1412_v32 }
 0x60a   :  { %1262 = vmatprep.mubr.msk.f32.mxu1 %vm1414_vm0, %v1412_v32 }
 0x60c   :  { %1290 = vmatpush3.bf16.msra.mxu0 %v1341_v63 }
 0x66d   :  { %v856_v19 = vpop.permute.xlu1 %855 }
 0x66e   :  { %v858_v23 = vsub.f32 %v849_v20, %v856_v19 }
 0x671   :  { %v869_v29 = vpop.permute.xlu1 %868 }
 0x6c5   :  { %v642_v11 = vpop.f32.mrf.mxu1 }
 0x6c7   :  { %v1254_v12 = vpop.f32.mrf.mxu1 }
 0x6c9   :  { %v753_v13 = vpop.f32.mrf.mxu1 }
 0x6ca   :  { %v757_v14 = vmul.f32 0.17677669, %v753_v13 }
 0x6cb   :  { %v1259_v15 = vpop.f32.mrf.mxu1 }
 0x6cc   :  { %v758_v16 = vsel %vm221_vm3, %v757_v14, -1e+30 }
 0x6cd   :  { %v759_v17 = vsel %vm375_vm4, %v758_v16, -inf }
 0x6ce   :  { %760 = vmax.xlane.f32.xlu0 %v759_v17 }
 0x6e4   :  { %859 = vrot.lane.b32.xlu0 %v1484_v21, %s1413_s4 }
 0x6e8   :  { %770 = vrot.lane.b32.xlu0 %v1503_v35, %s1416_s26 }
 0x6ec   :  { %873 = vrot.lane.b32.xlu0 %v858_v23, %s1416_s26 }
 0x757   :  { %v761_v24 = vpop.xlane.xlu0 %760 }
 0x758   :  { %v762_v25 = vsub.f32 %v758_v16, %v761_v24 }
 0x75a   :  { %v763_v26 = vmul.f32 1.442695, %v762_v25 }
 0x75b   :  { %v860_v27 = vpop.permute.xlu0 %859 }
 0x75c   :  { %1352 = vpow2.f32 %v763_v26  ;;  %v862_v28 = vmul.f32 %v860_v27, %v1500_v33 }
 0x75e   :  { %v871_v30 = vadd.f32 %v869_v29, %v862_v28 }
 0x75f   :  { %v771_v31 = vpop.permute.xlu0 %770 }
 0x760   :  { %1261 = vmatpush3.msra.mxu1 %v771_v31  ;;  %877 = vrot.lane.b32.xlu0 %v871_v30, %s1416_s26 }
 0x761   :  { %1265 = vmatprep.subr.mxu1 %v1412_v32 }
 0x763   :  { %v874_v37 = vpop.permute.xlu0 %873 }
 0x769   :  { %v1353_v21 = vpop.eup %1352 }
 0x76a   :  { %v765_v35 = vsel %vm375_vm4, %v1353_v21, 0.0 }
 0x76b   :  { %766 = vadd.xlane.f32.xlu1 %v765_v35 }
 0x7d2   :  { %v878_v40 = vpop.permute.xlu0 %877 }
 0x7d3   :  { %v880_v33 = vsel %vm244_vm1, %v874_v37, %v878_v40 }
 0x7f4   :  { %v767_v36 = vpop.xlane.xlu1 %766 }
 0x7f5   :  { %1354 = vrcp.f32 %v767_v36 }
 0x802   :  { %v1355_v38 = vpop.eup %1354 }
 0x803   :  { %v769_v39 = vmul.f32 %v1355_v38, %v1353_v21 }
 0x805   :  { %1263 = vmatmul.mubr.msk.f32.vlgmr.msra.gmra.mxu1 %vm375_vm4, %v769_v39 }
 0x806   :  { %1266 = vmatpush3.xpose.msk.msra.mxu1 %vm296_vm2, %v280_v8  ;;  %1267 = vmatprep.mubr.msk.f32.mxu1 %vm1414_vm0, %v1412_v32 }
 0x807   :  { %1270 = vmatprep.subr.mxu1 %v1412_v32 }
 0x809   :  { %1268 = vmatmul.mubr.msk.f32.vlgmr.msra.gmra.mxu1 %vm296_vm2, %v880_v33 }
 0x80a   :  { %1271 = vmatpush3.msra.mxu1 %v771_v31  ;;  %1272 = vmatprep.mubr.msk.f32.mxu1 %vm1414_vm0, %v1412_v32 }
 0x8c5   :  { %v842_v41 = vpop.f32.mrf.mxu1 }
 0x8c7   :  { %v1264_v42 = vpop.f32.mrf.mxu1 }
 0x8c9   :  { %v950_v43 = vpop.f32.mrf.mxu1 }
 0x8ca   :  { %v954_v44 = vmul.f32 0.17677669, %v950_v43 }
 0x8cb   :  { %v1269_v45 = vpop.f32.mrf.mxu1 }
 0x8cc   :  { %v955_v46 = vsel %vm221_vm3, %v954_v44, -1e+30 }
 0x8cd   :  { %v956_v47 = vsel %vm375_vm4, %v955_v46, -inf }
 0x8ce   :  { %957 = vmax.xlane.f32.xlu0 %v956_v47 }
 0x8e4   :  { %1045 = vrot.lane.b32.xlu0 %v842_v41, %s1408_s15 }
 0x957   :  { %v958_v48 = vpop.xlane.xlu0 %957 }
 0x958   :  { %v959_v49 = vsub.f32 %v955_v46, %v958_v48 }
 0x95a   :  { %v960_v50 = vmul.f32 1.442695, %v959_v49 }
 0x95b   :  { %v1046_v4 = vpop.permute.xlu0 %1045 }
 0x95c   :  { %1356 = vpow2.f32 %v960_v50 }
 0x969   :  { %v1357_v51 = vpop.eup %1356 }
 0x96a   :  { %v962_v52 = vsel %vm375_vm4, %v1357_v51, 0.0 }
 0x96b   :  { %963 = vadd.xlane.f32.xlu1 %v962_v52 }
 0x97c   :  { %1041 = vrot.lane.b32.xlu1 %v642_v11, %s1416_s26 }
 0x9f4   :  { %v964_v53 = vpop.xlane.xlu1 %963 }
 0x9f5   :  { %1358 = vrcp.f32 %v964_v53 }
 0x9f8   :  { %v1042_v2 = vpop.permute.xlu1 %1041 }
 0x9f9   :  { %v1052_v3 = vsel %vm296_vm2, %v1590_v34, %v1042_v2 }
 0x9fa   :  { %v1054_v5 = vsel %vm1053_vm5, %v1052_v3, %v1046_v4 }
 0xa02   :  { %v1359_v54 = vpop.eup %1358 }
 0xa03   :  { %v966_v61 = vmul.f32 %v1359_v54, %v1357_v51 }
 0xa05   :  { %1273 = vmatmul.mubr.msk.f32.vlgmr.msra.gmra.mxu1 %vm375_vm4, %v966_v61 }
 0xac5   :  { %v1036_v0 = vpop.f32.mrf.mxu1 }
 0xac6   :  { %1049 = vrot.lane.b32.xlu1 %v1036_v0, %s1417_s27 }
 0xac7   :  { %v1274_v1 = vpop.f32.mrf.mxu1 }
 0xb38   :  { %v1050_v6 = vpop.permute.xlu1 %1049 }
 0xb39   :  { %v1056_v7 = vsel %vm1055_vm6, %v1054_v5, %v1050_v6 }
 0xb3a   :  { %v1057_v22 = vpack.c.bf16 %v1056_v7, %v1056_v7 }
 0xb3c   :  { %1292 = vmatmul.mubr.bf16.vlgmr.msra.gmra.mxu0 %v1057_v22 }
 0xbfc   :  { %v1156_v8 = vpop.f32.mrf.mxu0 }
 0xbfd   :  { %1162 = vst [vmem:[%s1679_s7] sm:$0xff] %v1156_v8 }
 0xbfe   :  { %v1293_v32 = vpop.f32.mrf.mxu0 }
 0xc00   :  { %v1159_v9 = vpop.f32.mrf.mxu0 }
 0xc02   :  { %v1294_v10 = vpop.f32.mrf.mxu0 }
 0xc03   :  { %1171 = vsyncpa [#allocation3], 1 }
 0xc04   :  { %1172 = vsyncpa [#allocation5], 1 }

// kernel: mixtral_decoder_layer.3
= control target key start
LH: loop header
LB: loop body
LE: loop exit
PB: predicated region body
PF: predicated region fallthrough
CT: control target
= control target key end

     0   :  { %13 = vsyncpa [#allocation3], 0  ;;  %s2786_s0 = inlined_call_operand.vmem [shape: f32[8,128], index: 0, kind: input, shape index: {}]   ;;  %s2787_s1 = inlined_call_operand.vmem [shape: f32[8,128], index: 1, kind: input, shape index: {}]   ;;  %s2788_s2 = inlined_call_operand.vmem [shape: f32[1,128], index: 2, kind: input, shape index: {}]   ;;  %s2789_s3 = inlined_call_operand.vmem [shape: bf16[128,128], index: 3, kind: input, shape index: {}]   ;;  %s2790_s4 = inlined_call_operand.hbm [shape: bf16[128,2048], index: 4, kind: input, shape index: {}]   ;;  %s2791_s5 = inlined_call_operand.hbm [shape: bf16[4,256,128], index: 5, kind: input, shape index: {}]   ;;  %s2792_s6 = inlined_call_operand.hbm [shape: f32[8,128], index: 6, kind: output, shape index: {0}]   ;;  %s2793_s7 = inlined_call_operand.hbm [shape: f32[8,128], index: 7, kind: output, shape index: {1}]  }
   0x1   :  { %14 = vsyncpa [#allocation6], 0 }
   0x2   :  { %15 = vsyncpa [#allocation4], 0 }
   0x3   :  { %16 = vsyncpa [#allocation9], 0  ;;  %s2649_s24 = smov [#allocation2]  }
   0x4   :  { %s30_s25 = sshll.u32 %s2649_s24, 4  ;;  %s31_s25 = int_to_ptr.vmem [resolvable:$true] %s30_s25 }
   0x5   :  { %s2569_s26 = scalar_lea.vmem %s31_s25, 16384  ;;  %p2574_p1 = scmp.lt.s32.totalorder %s31_s25, %s31_s25 }
   0x6   :  { %p2570_p0 = scmp.ne.s32.totalorder %s31_s25, %s2569_s26  ;;  %p2575_p2 = scmp.lt.s32.totalorder %s2569_s26, %s2569_s26 }
   0x8   :  { %p2576_p3 = por %p2575_p2, %p2574_p1 }
   0xa   :  { %p2577_p4 = pnand %p2576_p3, %p2570_p0 }
   0xc   :  { %2580 = shalt.err (!%p2577_p4)
}
   0xd   :  { %s2650_s27 = smov 1024   ;;  %s2651_s28 = smov 64  }
   0xe   :  { %36 = dma.hbm_to_vmem [thread:$0]  %s2790_s4, 16384, %s31_s25, [#allocation3], %s2650_s27, %s2650_s27, %s2651_s28  }
   0xf   :  { %s2652_s8 = smov [#allocation5]  }
  0x10   :  { %s42_s9 = sshll.u32 %s2652_s8, 4  ;;  %s43_s9 = int_to_ptr.vmem [resolvable:$true] %s42_s9 }
  0x11   :  { %s2589_s10 = scalar_lea.vmem %s43_s9, 8192  ;;  %p2594_p6 = scmp.lt.s32.totalorder %s43_s9, %s43_s9 }
  0x12   :  { %p2590_p5 = scmp.ne.s32.totalorder %s43_s9, %s2589_s10  ;;  %p2595_p7 = scmp.lt.s32.totalorder %s2589_s10, %s2589_s10 }
  0x14   :  { %p2596_p8 = por %p2595_p7, %p2594_p6 }
  0x16   :  { %p2597_p9 = pnand %p2596_p8, %p2590_p5 }
  0x18   :  { %2600 = shalt.err (!%p2597_p9)
}
  0x19   :  { %s2653_s11 = smov 4  }
  0x1a   :  { %48 = dma.hbm_to_vmem [thread:$0]  %s2791_s5, 8192, %s43_s9, [#allocation6], %s2651_s28, %s2651_s28, %s2653_s11  }
  0x1b   :  { %2641 = dma.done.wait [#allocation3], 16384  }
  0x1c   :  { %2642 = vsyncadd [#allocation3], 4294950912 }
  0x1d   :  { %2643 = dma.done.wait [#allocation6], 8192  }
  0x1e   :  { %2644 = vsyncadd [#allocation6], 4294959104  ;;  %v2654_v0 = vmov 0.0   ;;  %v56_v1 = vld [vmem:[%s2786_s0] sm:$0xff]  ;;  %v2449_v7 = vld [vmem:[%s2789_s3 + $0x38] sm:$0xff]   ;;  %vm2655_vm0 = vmmov 0  }
  0x1f   :  { %2411 = vmatprep.subr.bf16.mxu0 %v2654_v0  ;;  %v57_v2 = vld [vmem:[%s2787_s1] sm:$0xff]  ;;  %v2450_v13 = vld [vmem:[%s2789_s3 + $0x30] sm:$0xff]   ;;  %v2451_v18 = vld [vmem:[%s2789_s3 + $0x28] sm:$0xff]   ;;  %2427 = vmatprep.mubr.msk.bf16.mxu0 %vm2655_vm0, %v2654_v0  ;;  %v2656_v52 = vmov 0  }
  0x20   :  { %v318_v3 = vld [vmem:[#allocation2 + $0x380] sm:$0xff]  ;;  %v2715_v4 = vadd.f32 %v57_v2, %v56_v1  ;;  %2412 = vmatpush3.bf16.msra.mxu0 %v2449_v7  ;;  %v2453_v28 = vld [vmem:[%s2789_s3 + $0x18] sm:$0xff]   ;;  %v2454_v33 = vld [vmem:[%s2789_s3 + $0x10] sm:$0xff]   ;;  %1006 = vmatprep.mubr.bf16.mxu1 %v2656_v52 }
  0x21   :  { %v326_v5 = vld [vmem:[#allocation2 + $0x3c0] sm:$0xff]  ;;  %2413 = vmatprep.subr.bf16.mxu0 %v2654_v0  ;;  %v2455_v38 = vld [vmem:[%s2789_s3 + $0x8] sm:$0xff]   ;;  %v320_v47 = vld [vmem:[#allocation2 + $0x390] sm:$0xff]  ;;  %2444 = vset.pattern.permute.xlu0 %v2656_v52 }
  0x22   :  { %v2227_v6 = vcombine.high %v318_v3, %v326_v5  ;;  %v2226_v8 = vcombine.low %v318_v3, %v326_v5  ;;  %v302_v9 = vld [vmem:[#allocation2 + $0x300] sm:$0xff]  ;;  %v60_v11 = vmul.f32 %v2715_v4, %v2715_v4  ;;  %59 = vst [vmem:[#allocation8] sm:$0xff] %v2715_v4  ;;  %v319_v45 = vld [vmem:[#allocation2 + $0x388] sm:$0xff]  ;;  %v328_v49 = vld [vmem:[#allocation2 + $0x3d0] sm:$0xff] }
  0x23   :  { %v310_v10 = vld [vmem:[#allocation2 + $0x340] sm:$0xff]  ;;  %v327_v46 = vld [vmem:[#allocation2 + $0x3c8] sm:$0xff]  ;;  %v2230_v51 = vcombine.low %v320_v47, %v328_v49  ;;  %v2231_v53 = vcombine.high %v320_v47, %v328_v49  ;;  %v304_v62 = vld [vmem:[#allocation2 + $0x310] sm:$0xff] }
  0x24   :  { %v2211_v12 = vcombine.high %v302_v9, %v310_v10  ;;  %974 = vmatprep.subr.bf16.mxu1 %v2227_v6  ;;  %v286_v14 = vld [vmem:[#allocation2 + $0x280] sm:$0xff]  ;;  %61 = vadd.xlane.f32.xlu0 %v60_v11  ;;  %v2210_v16 = vcombine.low %v302_v9, %v310_v10  ;;  %v2229_v48 = vcombine.high %v319_v45, %v327_v46  ;;  %v303_v60 = vld [vmem:[#allocation2 + $0x308] sm:$0xff]  ;;  %v312_v63 = vld [vmem:[#allocation2 + $0x350] sm:$0xff] }
  0x25   :  { %v294_v15 = vld [vmem:[#allocation2 + $0x2c0] sm:$0xff]  ;;  %975 = vmatpush1.bf16.msra.mxu1 %v2226_v8  ;;  %2414 = vmatpush3.bf16.msra.mxu0 %v2450_v13  ;;  %v2228_v50 = vcombine.low %v319_v45, %v327_v46  ;;  %v311_v61 = vld [vmem:[#allocation2 + $0x348] sm:$0xff]  ;;  %v2215_v3 = vcombine.high %v304_v62, %v312_v63  ;;  %v288_v7 = vld [vmem:[#allocation2 + $0x290] sm:$0xff]  ;;  %v2214_v9 = vcombine.low %v304_v62, %v312_v63 }
  0x26   :  { %976 = vmatprep.subr.bf16.mxu1 %v2211_v12  ;;  %v2195_v17 = vcombine.high %v286_v14, %v294_v15  ;;  %2415 = vmatprep.subr.bf16.mxu0 %v2654_v0  ;;  %v2194_v19 = vcombine.low %v286_v14, %v294_v15  ;;  %v270_v20 = vld [vmem:[#allocation2 + $0x200] sm:$0xff]  ;;  %v2213_v2 = vcombine.high %v303_v60, %v311_v61  ;;  %v287_v5 = vld [vmem:[#allocation2 + $0x288] sm:$0xff]  ;;  %v296_v8 = vld [vmem:[#allocation2 + $0x2d0] sm:$0xff] }
  0x27   :  { %v278_v21 = vld [vmem:[#allocation2 + $0x240] sm:$0xff]  ;;  %v295_v6 = vld [vmem:[#allocation2 + $0x2c8] sm:$0xff]  ;;  %v2199_v11 = vcombine.high %v288_v7, %v296_v8  ;;  %v272_v14 = vld [vmem:[#allocation2 + $0x210] sm:$0xff] }
  0x28   :  { %v2179_v22 = vcombine.high %v270_v20, %v278_v21  ;;  %v2452_v23 = vld [vmem:[%s2789_s3 + $0x20] sm:$0xff]   ;;  %v2178_v24 = vcombine.low %v270_v20, %v278_v21  ;;  %v2197_v10 = vcombine.high %v287_v5, %v295_v6  ;;  %v271_v12 = vld [vmem:[#allocation2 + $0x208] sm:$0xff]  ;;  %v280_v15 = vld [vmem:[#allocation2 + $0x250] sm:$0xff] }
  0x29   :  { %977 = vmatpush1.bf16.msra.mxu1 %v2210_v16  ;;  %2416 = vmatpush3.bf16.msra.mxu0 %v2451_v18  ;;  %v254_v25 = vld [vmem:[#allocation2 + $0x180] sm:$0xff]  ;;  %v279_v13 = vld [vmem:[#allocation2 + $0x248] sm:$0xff]  ;;  %v2196_v16 = vcombine.low %v287_v5, %v295_v6  ;;  %v208_v46 = vld [vmem:[#allocation2 + $0x10] sm:$0xff] }
  0x2a   :  { %978 = vmatprep.subr.bf16.mxu1 %v2195_v17  ;;  %2417 = vmatprep.subr.bf16.mxu0 %v2654_v0  ;;  %v262_v26 = vld [vmem:[#allocation2 + $0x1c0] sm:$0xff]  ;;  %v2198_v17 = vcombine.low %v288_v7, %v296_v8  ;;  %v2181_v18 = vcombine.high %v271_v12, %v279_v13  ;;  %v255_v20 = vld [vmem:[#allocation2 + $0x188] sm:$0xff]  ;;  %v216_v47 = vld [vmem:[#allocation2 + $0x50] sm:$0xff] }
  0x2b   :  { %v2163_v27 = vcombine.high %v254_v25, %v262_v26  ;;  %v2162_v29 = vcombine.low %v254_v25, %v262_v26  ;;  %v238_v30 = vld [vmem:[#allocation2 + $0x100] sm:$0xff]  ;;  %v263_v21 = vld [vmem:[#allocation2 + $0x1c8] sm:$0xff]  ;;  %v2182_v25 = vcombine.low %v272_v14, %v280_v15  ;;  %v313_v62 = vld [vmem:[#allocation2 + $0x358] sm:$0xff] }
  0x2c   :  { %v246_v31 = vld [vmem:[#allocation2 + $0x140] sm:$0xff]  ;;  %v2165_v26 = vcombine.high %v255_v20, %v263_v21  ;;  %v215_v45 = vld [vmem:[#allocation2 + $0x48] sm:$0xff]  ;;  %v289_v7 = vld [vmem:[#allocation2 + $0x298] sm:$0xff] }
  0x2d   :  { %979 = vmatpush1.bf16.msra.mxu1 %v2194_v19  ;;  %2418 = vmatpush3.bf16.msra.mxu0 %v2452_v23  ;;  %v2147_v32 = vcombine.high %v238_v30, %v246_v31  ;;  %v2146_v34 = vcombine.low %v238_v30, %v246_v31  ;;  %v222_v35 = vld [vmem:[#allocation2 + $0x80] sm:$0xff]  ;;  %v2183_v19 = vcombine.high %v272_v14, %v280_v15  ;;  %v264_v23 = vld [vmem:[#allocation2 + $0x1d0] sm:$0xff]  ;;  %v297_v8 = vld [vmem:[#allocation2 + $0x2d8] sm:$0xff] }
  0x2e   :  { %980 = vmatprep.subr.bf16.mxu1 %v2179_v22  ;;  %2419 = vmatprep.subr.bf16.mxu0 %v2654_v0  ;;  %v230_v36 = vld [vmem:[#allocation2 + $0xc0] sm:$0xff]  ;;  %v256_v22 = vld [vmem:[#allocation2 + $0x190] sm:$0xff]  ;;  %v273_v14 = vld [vmem:[#allocation2 + $0x218] sm:$0xff] }
  0x2f   :  { %v2131_v37 = vcombine.high %v222_v35, %v230_v36  ;;  %v2130_v39 = vcombine.low %v222_v35, %v230_v36  ;;  %v206_v40 = vld [vmem:[#allocation2] sm:$0xff]  ;;  %v240_v30 = vld [vmem:[#allocation2 + $0x110] sm:$0xff]  ;;  %v223_v36 = vld [vmem:[#allocation2 + $0x88] sm:$0xff] }
  0x30   :  { %v214_v41 = vld [vmem:[#allocation2 + $0x40] sm:$0xff]  ;;  %v248_v31 = vld [vmem:[#allocation2 + $0x150] sm:$0xff]  ;;  %v281_v15 = vld [vmem:[#allocation2 + $0x258] sm:$0xff] }
  0x31   :  { %981 = vmatpush1.bf16.msra.mxu1 %v2178_v24  ;;  %2420 = vmatpush3.bf16.msra.mxu0 %v2453_v28  ;;  %v2115_v42 = vcombine.high %v206_v40, %v214_v41  ;;  %v2456_v43 = vld [vmem:[%s2789_s3] sm:$0xff]   ;;  %v2114_v44 = vcombine.low %v206_v40, %v214_v41  ;;  %v2180_v24 = vcombine.low %v271_v12, %v279_v13  ;;  %v239_v28 = vld [vmem:[#allocation2 + $0x108] sm:$0xff] }
  0x32   :  { %982 = vmatprep.subr.bf16.mxu1 %v2163_v27  ;;  %2421 = vmatprep.subr.bf16.mxu0 %v2654_v0  ;;  %v2105_v58 = vld [vmem:[%s2788_s2] ss:$0 sm:$0xff]  ;;  %v2167_v27 = vcombine.high %v256_v22, %v264_v23  ;;  %v2151_v35 = vcombine.high %v240_v30, %v248_v31  ;;  %v2150_v41 = vcombine.low %v240_v30, %v248_v31  ;;  %v241_v30 = vld [vmem:[#allocation2 + $0x118] sm:$0xff]  ;;  %s2660_s2 = smov [#allocation8]  }
  0x33   :  { %v306_v63 = vld [vmem:[#allocation2 + $0x320] sm:$0xff]  ;;  %v2201_v12 = vcombine.high %v289_v7, %v297_v8  ;;  %v249_v31 = vld [vmem:[#allocation2 + $0x158] sm:$0xff]  ;;  %s2091_s8 = sshll.u32 %s2660_s2, 4  ;;  %s2092_s8 = int_to_ptr.vmem [resolvable:$true] %s2091_s8 }
  0x34   :  { %s2601_s9 = scalar_lea.vmem %s2092_s8, 128  ;;  %p2606_p11 = scmp.lt.s32.totalorder %s2092_s8, %s2092_s8 }
  0x35   :  { %983 = vmatpush1.bf16.msra.mxu1 %v2162_v29  ;;  %2422 = vmatpush3.bf16.msra.mxu0 %v2454_v33  ;;  %v247_v29 = vld [vmem:[#allocation2 + $0x148] sm:$0xff]  ;;  %v2166_v33 = vcombine.low %v256_v22, %v264_v23  ;;  %v257_v22 = vld [vmem:[#allocation2 + $0x198] sm:$0xff]  ;;  %p2602_p10 = scmp.ne.s32.totalorder %s2092_s8, %s2601_s9  ;;  %p2607_p12 = scmp.lt.s32.totalorder %s2601_s9, %s2601_s9 }
  0x36   :  { %984 = vmatprep.subr.bf16.mxu1 %v2147_v32  ;;  %2423 = vmatprep.subr.bf16.mxu0 %v2654_v0  ;;  %v2164_v32 = vcombine.low %v255_v20, %v263_v21  ;;  %v2148_v40 = vcombine.low %v239_v28, %v247_v29  ;;  %v2185_v20 = vcombine.high %v273_v14, %v281_v15  ;;  %v265_v23 = vld [vmem:[#allocation2 + $0x1d8] sm:$0xff] }
  0x37   :  { %p2608_p13 = por %p2607_p12, %p2606_p11 }
  0x39   :  { %985 = vmatpush1.bf16.msra.mxu1 %v2146_v34  ;;  %2424 = vmatpush3.bf16.msra.mxu0 %v2455_v38  ;;  %v2149_v34 = vcombine.high %v239_v28, %v247_v29  ;;  %v224_v38 = vld [vmem:[#allocation2 + $0x90] sm:$0xff]  ;;  %v2169_v28 = vcombine.high %v257_v22, %v265_v23  ;;  %p2609_p0 = pnand %p2608_p13, %p2602_p10 }
  0x3a   :  { %986 = vmatprep.subr.bf16.mxu1 %v2131_v37  ;;  %2425 = vmatprep.subr.bf16.mxu0 %v2654_v0  ;;  %v231_v37 = vld [vmem:[#allocation2 + $0xc8] sm:$0xff] }
  0x3d   :  { %987 = vmatpush1.bf16.msra.mxu1 %v2130_v39  ;;  %2426 = vmatpush3.bf16.msra.mxu0 %v2456_v43  ;;  %v232_v39 = vld [vmem:[#allocation2 + $0xd0] sm:$0xff] }
  0x3e   :  { %988 = vmatprep.subr.bf16.mxu1 %v2115_v42  ;;  %1015 = vmatprep.subr.bf16.mxu0 %v2229_v48  ;;  %v2133_v42 = vcombine.high %v223_v36, %v231_v37  ;;  %v2135_v43 = vcombine.high %v224_v38, %v232_v39  ;;  %v2132_v48 = vcombine.low %v223_v36, %v231_v37 }
  0x3f   :  { %v2134_v49 = vcombine.low %v224_v38, %v232_v39  ;;  %v2153_v36 = vcombine.high %v241_v30, %v249_v31  ;;  %v225_v38 = vld [vmem:[#allocation2 + $0x98] sm:$0xff] }
  0x40   :  { %v233_v39 = vld [vmem:[#allocation2 + $0xd8] sm:$0xff] }
  0x41   :  { %989 = vmatpush1.bf16.msra.mxu1 %v2114_v44  ;;  %v207_v44 = vld [vmem:[#allocation2 + $0x8] sm:$0xff] }
  0x42   :  { %1056 = vmatprep.subr.bf16.mxu1 %v2231_v53  ;;  %v321_v53 = vld [vmem:[#allocation2 + $0x398] sm:$0xff] }
  0xad   :  { %v62_v54 = vpop.xlane.xlu0 %61 }
  0xae   :  { %v64_v55 = vmul.f32 0.0078125, %v62_v54  ;;  %v329_v54 = vld [vmem:[#allocation2 + $0x3d8] sm:$0xff] }
  0xb0   :  { %v65_v56 = vadd.f32 1e-05, %v64_v55  ;;  %v322_v55 = vld [vmem:[#allocation2 + $0x3a0] sm:$0xff] }
  0xb2   :  { %2521 = vrsqrt.f32 %v65_v56  ;;  %v330_v56 = vld [vmem:[#allocation2 + $0x3e0] sm:$0xff] }
  0xbf   :  { %v2522_v57 = vpop.eup %2521 }
  0xc0   :  { %v67_v59 = vmul.f32 %v2522_v57, %v2715_v4  ;;  %v2212_v4 = vcombine.low %v303_v60, %v311_v61  ;;  %v2116_v57 = vcombine.low %v207_v44, %v215_v45  ;;  %v2235_v60 = vcombine.high %v322_v55, %v330_v56  ;;  %v305_v61 = vld [vmem:[#allocation2 + $0x318] sm:$0xff] }
  0xc1   :  { %v2217_v5 = vcombine.high %v305_v61, %v313_v62 }
  0xc2   :  { %v75_v0 = vmul.f32 %v2105_v58, %v67_v59  ;;  %v2118_v58 = vcombine.low %v208_v46, %v216_v47  ;;  %v2233_v59 = vcombine.high %v321_v53, %v329_v54 }
  0xc4   :  { %v2758_v1 = vpack.c.bf16 %v75_v0, %v75_v0  ;;  %v314_v0 = vld [vmem:[#allocation2 + $0x360] sm:$0xff] }
  0xc5   :  { %v2219_v6 = vcombine.high %v306_v63, %v314_v0 }
  0xc6   :  { %2428 = vmatmul.mubr.bf16.vlgmr.msra.gmra.mxu0 %v2758_v1  ;;  %1007 = vmatmul.mubr.bf16.vlgmr.msra.gmra.mxu1 %v2758_v1 }
  0xc7   :  { %1016 = vmatpush1.bf16.msra.mxu0 %v2228_v50  ;;  %1057 = vmatpush1.bf16.msra.mxu1 %v2230_v51  ;;  %v2117_v50 = vcombine.high %v207_v44, %v215_v45  ;;  %v2119_v51 = vcombine.high %v208_v46, %v216_v47  ;;  %v2137_v44 = vcombine.high %v225_v38, %v233_v39  ;;  %v209_v46 = vld [vmem:[#allocation2 + $0x18] sm:$0xff] }
  0xc8   :  { %1017 = vmatprep.subr.bf16.mxu0 %v2213_v2  ;;  %1058 = vmatprep.subr.bf16.mxu1 %v2215_v3  ;;  %v2232_v2 = vcombine.low %v321_v53, %v329_v54  ;;  %v2234_v3 = vcombine.low %v322_v55, %v330_v56  ;;  %v217_v47 = vld [vmem:[#allocation2 + $0x58] sm:$0xff]  ;;  %v323_v55 = vld [vmem:[#allocation2 + $0x3a8] sm:$0xff] }
  0xc9   :  { %1047 = vmatprep.mubr.bf16.mxu0 %v2656_v52  ;;  %1088 = vmatprep.mubr.bf16.mxu1 %v2656_v52  ;;  %v2121_v53 = vcombine.high %v209_v46, %v217_v47  ;;  %v331_v56 = vld [vmem:[#allocation2 + $0x3e8] sm:$0xff] }
  0xcb   :  { %1018 = vmatpush1.bf16.msra.mxu0 %v2212_v4  ;;  %1059 = vmatpush1.bf16.msra.mxu1 %v2214_v9  ;;  %v290_v4 = vld [vmem:[#allocation2 + $0x2a0] sm:$0xff] }
  0xcc   :  { %1019 = vmatprep.subr.bf16.mxu0 %v2197_v10  ;;  %1060 = vmatprep.subr.bf16.mxu1 %v2199_v11  ;;  %v298_v9 = vld [vmem:[#allocation2 + $0x2e0] sm:$0xff]  ;;  %v2216_v10 = vcombine.low %v305_v61, %v313_v62  ;;  %v2218_v11 = vcombine.low %v306_v63, %v314_v0  ;;  %v2237_v61 = vcombine.high %v323_v55, %v331_v56  ;;  %v307_v63 = vld [vmem:[#allocation2 + $0x328] sm:$0xff] }
  0xcd   :  { %v2203_v13 = vcombine.high %v290_v4, %v298_v9  ;;  %v315_v0 = vld [vmem:[#allocation2 + $0x368] sm:$0xff] }
  0xcf   :  { %1020 = vmatpush1.bf16.msra.mxu0 %v2196_v16  ;;  %1061 = vmatpush1.bf16.msra.mxu1 %v2198_v17  ;;  %v274_v16 = vld [vmem:[#allocation2 + $0x220] sm:$0xff] }
  0xd0   :  { %1021 = vmatprep.subr.bf16.mxu0 %v2181_v18  ;;  %1062 = vmatprep.subr.bf16.mxu1 %v2183_v19  ;;  %v282_v17 = vld [vmem:[#allocation2 + $0x260] sm:$0xff]  ;;  %v2200_v18 = vcombine.low %v289_v7, %v297_v8  ;;  %v2202_v19 = vcombine.low %v290_v4, %v298_v9  ;;  %v2221_v7 = vcombine.high %v307_v63, %v315_v0  ;;  %v291_v4 = vld [vmem:[#allocation2 + $0x2a8] sm:$0xff] }
  0xd1   :  { %v2187_v21 = vcombine.high %v274_v16, %v282_v17  ;;  %v299_v9 = vld [vmem:[#allocation2 + $0x2e8] sm:$0xff] }
  0xd3   :  { %1022 = vmatpush1.bf16.msra.mxu0 %v2180_v24  ;;  %1063 = vmatpush1.bf16.msra.mxu1 %v2182_v25  ;;  %v258_v24 = vld [vmem:[#allocation2 + $0x1a0] sm:$0xff] }
  0xd4   :  { %1023 = vmatprep.subr.bf16.mxu0 %v2165_v26  ;;  %1064 = vmatprep.subr.bf16.mxu1 %v2167_v27  ;;  %v266_v25 = vld [vmem:[#allocation2 + $0x1e0] sm:$0xff]  ;;  %v2184_v26 = vcombine.low %v273_v14, %v281_v15  ;;  %v2186_v27 = vcombine.low %v274_v16, %v282_v17  ;;  %v2205_v14 = vcombine.high %v291_v4, %v299_v9  ;;  %v275_v16 = vld [vmem:[#allocation2 + $0x228] sm:$0xff] }
  0xd5   :  { %v2171_v29 = vcombine.high %v258_v24, %v266_v25  ;;  %v283_v17 = vld [vmem:[#allocation2 + $0x268] sm:$0xff] }
  0xd7   :  { %1024 = vmatpush1.bf16.msra.mxu0 %v2164_v32  ;;  %1065 = vmatpush1.bf16.msra.mxu1 %v2166_v33  ;;  %v242_v32 = vld [vmem:[#allocation2 + $0x120] sm:$0xff] }
  0xd8   :  { %1025 = vmatprep.subr.bf16.mxu0 %v2149_v34  ;;  %1066 = vmatprep.subr.bf16.mxu1 %v2151_v35  ;;  %v250_v33 = vld [vmem:[#allocation2 + $0x160] sm:$0xff]  ;;  %v2168_v34 = vcombine.low %v257_v22, %v265_v23  ;;  %v2170_v35 = vcombine.low %v258_v24, %v266_v25  ;;  %v2189_v22 = vcombine.high %v275_v16, %v283_v17  ;;  %v259_v24 = vld [vmem:[#allocation2 + $0x1a8] sm:$0xff] }
  0xd9   :  { %v2155_v37 = vcombine.high %v242_v32, %v250_v33  ;;  %v267_v25 = vld [vmem:[#allocation2 + $0x1e8] sm:$0xff] }
  0xdb   :  { %1026 = vmatpush1.bf16.msra.mxu0 %v2148_v40  ;;  %1067 = vmatpush1.bf16.msra.mxu1 %v2150_v41  ;;  %v226_v40 = vld [vmem:[#allocation2 + $0xa0] sm:$0xff] }
  0xdc   :  { %1027 = vmatprep.subr.bf16.mxu0 %v2133_v42  ;;  %1068 = vmatprep.subr.bf16.mxu1 %v2135_v43  ;;  %v234_v41 = vld [vmem:[#allocation2 + $0xe0] sm:$0xff]  ;;  %v2152_v42 = vcombine.low %v241_v30, %v249_v31  ;;  %v2154_v43 = vcombine.low %v242_v32, %v250_v33  ;;  %v2173_v30 = vcombine.high %v259_v24, %v267_v25  ;;  %v243_v32 = vld [vmem:[#allocation2 + $0x128] sm:$0xff] }
  0xdd   :  { %v2139_v45 = vcombine.high %v226_v40, %v234_v41  ;;  %v251_v33 = vld [vmem:[#allocation2 + $0x168] sm:$0xff] }
  0xdf   :  { %1028 = vmatpush1.bf16.msra.mxu0 %v2132_v48  ;;  %1069 = vmatpush1.bf16.msra.mxu1 %v2134_v49  ;;  %v210_v48 = vld [vmem:[#allocation2 + $0x20] sm:$0xff] }
  0xe0   :  { %1029 = vmatprep.subr.bf16.mxu0 %v2117_v50  ;;  %1070 = vmatprep.subr.bf16.mxu1 %v2119_v51  ;;  %v218_v49 = vld [vmem:[#allocation2 + $0x60] sm:$0xff]  ;;  %v2136_v50 = vcombine.low %v225_v38, %v233_v39  ;;  %v2138_v51 = vcombine.low %v226_v40, %v234_v41  ;;  %v2157_v38 = vcombine.high %v243_v32, %v251_v33  ;;  %v227_v40 = vld [vmem:[#allocation2 + $0xa8] sm:$0xff] }
  0xe1   :  { %v2123_v54 = vcombine.high %v210_v48, %v218_v49  ;;  %v235_v41 = vld [vmem:[#allocation2 + $0xe8] sm:$0xff] }
  0xe3   :  { %1030 = vmatpush1.bf16.msra.mxu0 %v2116_v57  ;;  %1071 = vmatpush1.bf16.msra.mxu1 %v2118_v58  ;;  %v324_v57 = vld [vmem:[#allocation2 + $0x3b0] sm:$0xff] }
  0xe4   :  { %1097 = vmatprep.subr.bf16.mxu0 %v2233_v59  ;;  %1138 = vmatprep.subr.bf16.mxu1 %v2235_v60  ;;  %v332_v58 = vld [vmem:[#allocation2 + $0x3f0] sm:$0xff]  ;;  %v2120_v59 = vcombine.low %v209_v46, %v217_v47  ;;  %v2122_v60 = vcombine.low %v210_v48, %v218_v49  ;;  %v2141_v46 = vcombine.high %v227_v40, %v235_v41  ;;  %v211_v48 = vld [vmem:[#allocation2 + $0x28] sm:$0xff] }
  0xe5   :  { %v2239_v62 = vcombine.high %v324_v57, %v332_v58  ;;  %v219_v49 = vld [vmem:[#allocation2 + $0x68] sm:$0xff] }
  0xe6   :  { %1048 = vmatmul.mubr.bf16.vlgmr.msra.gmra.mxu0 %v2758_v1  ;;  %1089 = vmatmul.mubr.bf16.vlgmr.msra.gmra.mxu1 %v2758_v1 }
  0xe7   :  { %1098 = vmatpush1.bf16.msra.mxu0 %v2232_v2  ;;  %1139 = vmatpush1.bf16.msra.mxu1 %v2234_v3  ;;  %v308_v2 = vld [vmem:[#allocation2 + $0x330] sm:$0xff] }
  0xe8   :  { %1099 = vmatprep.subr.bf16.mxu0 %v2217_v5  ;;  %1140 = vmatprep.subr.bf16.mxu1 %v2219_v6  ;;  %v316_v3 = vld [vmem:[#allocation2 + $0x370] sm:$0xff]  ;;  %v2236_v5 = vcombine.low %v323_v55, %v331_v56  ;;  %v2238_v6 = vcombine.low %v324_v57, %v332_v58  ;;  %v2125_v55 = vcombine.high %v211_v48, %v219_v49  ;;  %v325_v57 = vld [vmem:[#allocation2 + $0x3b8] sm:$0xff] }
  0xe9   :  { %1129 = vmatprep.mubr.bf16.mxu0 %v2656_v52  ;;  %1170 = vmatprep.mubr.bf16.mxu1 %v2656_v52  ;;  %v2223_v8 = vcombine.high %v308_v2, %v316_v3  ;;  %v333_v58 = vld [vmem:[#allocation2 + $0x3f8] sm:$0xff] }
  0xeb   :  { %1100 = vmatpush1.bf16.msra.mxu0 %v2216_v10  ;;  %1141 = vmatpush1.bf16.msra.mxu1 %v2218_v11  ;;  %v292_v10 = vld [vmem:[#allocation2 + $0x2b0] sm:$0xff] }
  0xec   :  { %1101 = vmatprep.subr.bf16.mxu0 %v2201_v12  ;;  %1142 = vmatprep.subr.bf16.mxu1 %v2203_v13  ;;  %v300_v11 = vld [vmem:[#allocation2 + $0x2f0] sm:$0xff]  ;;  %v2220_v12 = vcombine.low %v307_v63, %v315_v0  ;;  %v2222_v13 = vcombine.low %v308_v2, %v316_v3  ;;  %v309_v63 = vld [vmem:[#allocation2 + $0x338] sm:$0xff]  ;;  %v2240_v2 = vcombine.low %v325_v57, %v333_v58 }
  0xed   :  { %v2207_v15 = vcombine.high %v292_v10, %v300_v11  ;;  %v317_v0 = vld [vmem:[#allocation2 + $0x378] sm:$0xff] }
  0xee   :  { %v2225_v3 = vcombine.high %v309_v63, %v317_v0 }
  0xef   :  { %1102 = vmatpush1.bf16.msra.mxu0 %v2200_v18  ;;  %1143 = vmatpush1.bf16.msra.mxu1 %v2202_v19  ;;  %v276_v18 = vld [vmem:[#allocation2 + $0x230] sm:$0xff] }
  0xf0   :  { %1103 = vmatprep.subr.bf16.mxu0 %v2185_v20  ;;  %1144 = vmatprep.subr.bf16.mxu1 %v2187_v21  ;;  %v284_v19 = vld [vmem:[#allocation2 + $0x270] sm:$0xff]  ;;  %v2204_v20 = vcombine.low %v291_v4, %v299_v9  ;;  %v2206_v21 = vcombine.low %v292_v10, %v300_v11  ;;  %v2224_v4 = vcombine.low %v309_v63, %v317_v0  ;;  %v277_v11 = vld [vmem:[#allocation2 + $0x238] sm:$0xff] }
  0xf1   :  { %v2191_v23 = vcombine.high %v276_v18, %v284_v19  ;;  %v2460_v10 = vld [vmem:[#allocation5 + $0x30] sm:$0xff]  }
  0xf3   :  { %1104 = vmatpush1.bf16.msra.mxu0 %v2184_v26  ;;  %1145 = vmatpush1.bf16.msra.mxu1 %v2186_v27  ;;  %v260_v26 = vld [vmem:[#allocation2 + $0x1b0] sm:$0xff] }
  0xf4   :  { %1105 = vmatprep.subr.bf16.mxu0 %v2169_v28  ;;  %1146 = vmatprep.subr.bf16.mxu1 %v2171_v29  ;;  %v268_v27 = vld [vmem:[#allocation2 + $0x1f0] sm:$0xff]  ;;  %v2188_v28 = vcombine.low %v275_v16, %v283_v17  ;;  %v2190_v29 = vcombine.low %v276_v18, %v284_v19  ;;  %v2462_v16 = vld [vmem:[#allocation5 + $0x28] sm:$0xff]   ;;  %v261_v17 = vld [vmem:[#allocation2 + $0x1b8] sm:$0xff] }
  0xf5   :  { %v2175_v31 = vcombine.high %v260_v26, %v268_v27  ;;  %v269_v18 = vld [vmem:[#allocation2 + $0x1f8] sm:$0xff]  ;;  %v2463_v19 = vld [vmem:[#allocation5 + $0x60] sm:$0xff]  }
  0xf7   :  { %1106 = vmatpush1.bf16.msra.mxu0 %v2168_v34  ;;  %1147 = vmatpush1.bf16.msra.mxu1 %v2170_v35  ;;  %v244_v34 = vld [vmem:[#allocation2 + $0x130] sm:$0xff] }
  0xf8   :  { %1107 = vmatprep.subr.bf16.mxu0 %v2153_v36  ;;  %1148 = vmatprep.subr.bf16.mxu1 %v2155_v37  ;;  %v252_v35 = vld [vmem:[#allocation2 + $0x170] sm:$0xff]  ;;  %v2172_v36 = vcombine.low %v259_v24, %v267_v25  ;;  %v2174_v37 = vcombine.low %v260_v26, %v268_v27  ;;  %v2465_v24 = vld [vmem:[#allocation5 + $0x58] sm:$0xff]   ;;  %v2176_v25 = vcombine.low %v261_v17, %v269_v18 }
  0xf9   :  { %v2159_v39 = vcombine.high %v244_v34, %v252_v35  ;;  %v2466_v27 = vld [vmem:[#allocation5 + $0x18] sm:$0xff]  }
  0xfb   :  { %1108 = vmatpush1.bf16.msra.mxu0 %v2152_v42  ;;  %1149 = vmatpush1.bf16.msra.mxu1 %v2154_v43  ;;  %v228_v42 = vld [vmem:[#allocation2 + $0xb0] sm:$0xff] }
  0xfc   :  { %1109 = vmatprep.subr.bf16.mxu0 %v2137_v44  ;;  %1150 = vmatprep.subr.bf16.mxu1 %v2139_v45  ;;  %v236_v43 = vld [vmem:[#allocation2 + $0xf0] sm:$0xff]  ;;  %v2156_v44 = vcombine.low %v243_v32, %v251_v33  ;;  %v2158_v45 = vcombine.low %v244_v34, %v252_v35  ;;  %v213_v34 = vld [vmem:[#allocation2 + $0x38] sm:$0xff] }
  0xfd   :  { %v2143_v47 = vcombine.high %v228_v42, %v236_v43  ;;  %v2468_v33 = vld [vmem:[#allocation5 + $0x10] sm:$0xff]   ;;  %v221_v35 = vld [vmem:[#allocation2 + $0x78] sm:$0xff] }
  0xff   :  { %1110 = vmatpush1.bf16.msra.mxu0 %v2136_v50  ;;  %1151 = vmatpush1.bf16.msra.mxu1 %v2138_v51  ;;  %v212_v50 = vld [vmem:[#allocation2 + $0x30] sm:$0xff] }
 0x100   :  { %1111 = vmatprep.subr.bf16.mxu0 %v2121_v53  ;;  %1152 = vmatprep.subr.bf16.mxu1 %v2123_v54  ;;  %v220_v51 = vld [vmem:[#allocation2 + $0x70] sm:$0xff]  ;;  %v2140_v53 = vcombine.low %v227_v40, %v235_v41  ;;  %v2142_v54 = vcombine.low %v228_v42, %v236_v43  ;;  %v2471_v40 = vld [vmem:[#allocation5 + $0x40] sm:$0xff]   ;;  %v2128_v41 = vcombine.low %v213_v34, %v221_v35  ;;  %v2473_v43 = vld [vmem:[#allocation5 + $0xf8] sm:$0xff]  }
 0x101   :  { %v2127_v56 = vcombine.high %v212_v50, %v220_v51  ;;  %v2472_v42 = vld [vmem:[#allocation5] sm:$0xff]  }
 0x103   :  { %1112 = vmatpush1.bf16.msra.mxu0 %v2120_v59  ;;  %1153 = vmatpush1.bf16.msra.mxu1 %v2122_v60  ;;  %v2124_v59 = vcombine.low %v211_v48, %v219_v49  ;;  %v2126_v60 = vcombine.low %v212_v50, %v220_v51  ;;  %v2478_v48 = vld [vmem:[#allocation5 + $0xa8] sm:$0xff]   ;;  %v2479_v49 = vld [vmem:[#allocation5 + $0xe0] sm:$0xff]   ;;  %v2489_v50 = vld [vmem:[#allocation5 + $0x178] sm:$0xff]  }
 0x104   :  { %1179 = vmatprep.subr.bf16.mxu0 %v2237_v61  ;;  %1220 = vmatprep.subr.bf16.mxu1 %v2239_v62  ;;  %v2241_v61 = vcombine.high %v325_v57, %v333_v58  ;;  %v2457_v62 = vld [vmem:[#allocation5 + $0x78] sm:$0xff]   ;;  %v2480_v51 = vld [vmem:[#allocation5 + $0xa0] sm:$0xff]   ;;  %v2486_v57 = vld [vmem:[#allocation5 + $0x88] sm:$0xff]  }
 0x105   :  { %v2487_v58 = vld [vmem:[#allocation5 + $0xc0] sm:$0xff]  }
 0x106   :  { %1130 = vmatmul.mubr.bf16.vlgmr.msra.gmra.mxu0 %v2758_v1  ;;  %1171 = vmatmul.mubr.bf16.vlgmr.msra.gmra.mxu1 %v2758_v1 }
 0x107   :  { %1180 = vmatpush1.bf16.msra.mxu0 %v2236_v5  ;;  %1221 = vmatpush1.bf16.msra.mxu1 %v2238_v6  ;;  %v2458_v5 = vld [vmem:[#allocation5 + $0x38] sm:$0xff]  }
 0x108   :  { %1181 = vmatprep.subr.bf16.mxu0 %v2221_v7  ;;  %1222 = vmatprep.subr.bf16.mxu1 %v2223_v8  ;;  %v293_v6 = vld [vmem:[#allocation2 + $0x2b8] sm:$0xff]  ;;  %v2459_v8 = vld [vmem:[#allocation5 + $0x70] sm:$0xff]  }
 0x109   :  { %1211 = vmatprep.mubr.bf16.mxu0 %v2656_v52  ;;  %1252 = vmatprep.mubr.bf16.mxu1 %v2656_v52  ;;  %v301_v7 = vld [vmem:[#allocation2 + $0x2f8] sm:$0xff] }
 0x10a   :  { %v2209_v9 = vcombine.high %v293_v6, %v301_v7 }
 0x10b   :  { %1182 = vmatpush1.bf16.msra.mxu0 %v2220_v12  ;;  %1223 = vmatpush1.bf16.msra.mxu1 %v2222_v13  ;;  %v285_v12 = vld [vmem:[#allocation2 + $0x278] sm:$0xff]  ;;  %v2461_v13 = vld [vmem:[#allocation5 + $0x68] sm:$0xff]  }
 0x10c   :  { %1183 = vmatprep.subr.bf16.mxu0 %v2205_v14  ;;  %1224 = vmatprep.subr.bf16.mxu1 %v2207_v15  ;;  %v2208_v14 = vcombine.low %v293_v6, %v301_v7  ;;  %v2193_v15 = vcombine.high %v277_v11, %v285_v12 }
 0x10f   :  { %1184 = vmatpush1.bf16.msra.mxu0 %v2204_v20  ;;  %1225 = vmatpush1.bf16.msra.mxu1 %v2206_v21  ;;  %v2177_v20 = vcombine.high %v261_v17, %v269_v18  ;;  %v2464_v21 = vld [vmem:[#allocation5 + $0x20] sm:$0xff]  }
 0x110   :  { %1185 = vmatprep.subr.bf16.mxu0 %v2189_v22  ;;  %1226 = vmatprep.subr.bf16.mxu1 %v2191_v23  ;;  %v245_v22 = vld [vmem:[#allocation2 + $0x138] sm:$0xff] }
 0x111   :  { %v253_v23 = vld [vmem:[#allocation2 + $0x178] sm:$0xff] }
 0x112   :  { %v2161_v26 = vcombine.high %v245_v22, %v253_v23 }
 0x113   :  { %1186 = vmatpush1.bf16.msra.mxu0 %v2188_v28  ;;  %1227 = vmatpush1.bf16.msra.mxu1 %v2190_v29  ;;  %v229_v28 = vld [vmem:[#allocation2 + $0xb8] sm:$0xff] }
 0x114   :  { %1187 = vmatprep.subr.bf16.mxu0 %v2173_v30  ;;  %1228 = vmatprep.subr.bf16.mxu1 %v2175_v31  ;;  %v237_v29 = vld [vmem:[#allocation2 + $0xf8] sm:$0xff]  ;;  %v2467_v30 = vld [vmem:[#allocation5 + $0x50] sm:$0xff]   ;;  %v2160_v31 = vcombine.low %v245_v22, %v253_v23 }
 0x115   :  { %v2145_v32 = vcombine.high %v229_v28, %v237_v29 }
 0x117   :  { %1188 = vmatpush1.bf16.msra.mxu0 %v2172_v36  ;;  %1229 = vmatpush1.bf16.msra.mxu1 %v2174_v37  ;;  %v2469_v36 = vld [vmem:[#allocation5 + $0x48] sm:$0xff]   ;;  %v2144_v37 = vcombine.low %v229_v28, %v237_v29 }
 0x118   :  { %1189 = vmatprep.subr.bf16.mxu0 %v2157_v38  ;;  %1230 = vmatprep.subr.bf16.mxu1 %v2159_v39  ;;  %v2129_v38 = vcombine.high %v213_v34, %v221_v35  ;;  %v2470_v39 = vld [vmem:[#allocation5 + $0x8] sm:$0xff]   ;;  %v2492_v34 = vld [vmem:[#allocation5 + $0x130] sm:$0xff]  }
 0x119   :  { %v2493_v35 = vld [vmem:[#allocation5 + $0x168] sm:$0xff]  }
 0x11b   :  { %1190 = vmatpush1.bf16.msra.mxu0 %v2156_v44  ;;  %1231 = vmatpush1.bf16.msra.mxu1 %v2158_v45  ;;  %v2474_v44 = vld [vmem:[#allocation5 + $0xb8] sm:$0xff]   ;;  %v2475_v45 = vld [vmem:[#allocation5 + $0xf0] sm:$0xff]  }
 0x11c   :  { %1191 = vmatprep.subr.bf16.mxu0 %v2141_v46  ;;  %1232 = vmatprep.subr.bf16.mxu1 %v2143_v47  ;;  %v2476_v46 = vld [vmem:[#allocation5 + $0xb0] sm:$0xff]   ;;  %v2477_v47 = vld [vmem:[#allocation5 + $0xe8] sm:$0xff]  }
 0x11f   :  { %1192 = vmatpush1.bf16.msra.mxu0 %v2140_v53  ;;  %1233 = vmatpush1.bf16.msra.mxu1 %v2142_v54  ;;  %v2481_v53 = vld [vmem:[#allocation5 + $0xd8] sm:$0xff]  }
 0x120   :  { %1193 = vmatprep.subr.bf16.mxu0 %v2125_v55  ;;  %1234 = vmatprep.subr.bf16.mxu1 %v2127_v56  ;;  %v2482_v54 = vld [vmem:[#allocation5 + $0x98] sm:$0xff]   ;;  %v2483_v55 = vld [vmem:[#allocation5 + $0xd0] sm:$0xff]   ;;  %v2485_v56 = vld [vmem:[#allocation5 + $0xc8] sm:$0xff]  }
 0x123   :  { %1194 = vmatpush1.bf16.msra.mxu0 %v2124_v59  ;;  %1235 = vmatpush1.bf16.msra.mxu1 %v2126_v60  ;;  %v2488_v59 = vld [vmem:[#allocation5 + $0x80] sm:$0xff]   ;;  %v2505_v60 = vld [vmem:[#allocation5 + $0x1f8] sm:$0xff]  }
 0x124   :  { %1261 = vmatprep.subr.bf16.mxu0 %v2241_v61  ;;  %2323 = vmatprep.subr.bf16.mxu1 %v2457_v62  ;;  %v181_v61 = vlaneseq }
 0x126   :  { %1212 = vmatmul.mubr.bf16.vlgmr.msra.gmra.mxu0 %v2758_v1  ;;  %1253 = vmatmul.mubr.bf16.vlgmr.msra.gmra.mxu1 %v2758_v1  ;;  %v182_v62 = vand.u32 127, %v181_v61 }
 0x127   :  { %1262 = vmatpush1.bf16.msra.mxu0 %v2240_v2  ;;  %1293 = vmatprep.mubr.bf16.mxu0 %v2656_v52  ;;  %v2192_v52 = vcombine.low %v277_v11, %v285_v12 }
 0x128   :  { %1263 = vmatprep.subr.bf16.mxu0 %v2225_v3  ;;  %2324 = vmatpush3.bf16.msra.mxu1 %v2458_v5  ;;  %vm183_vm1 = vcmp.lt.s32.totalorder %v182_v62, 4 }
 0x129   :  { %2325 = vmatprep.subr.bf16.mxu1 %v2459_v8 }
 0x12b   :  { %1264 = vmatpush1.bf16.msra.mxu0 %v2224_v4 }
 0x12c   :  { %1265 = vmatprep.subr.bf16.mxu0 %v2209_v9  ;;  %2326 = vmatpush3.bf16.msra.mxu1 %v2460_v10 }
 0x12d   :  { %2327 = vmatprep.subr.bf16.mxu1 %v2461_v13 }
 0x12f   :  { %1266 = vmatpush1.bf16.msra.mxu0 %v2208_v14 }
 0x130   :  { %1267 = vmatprep.subr.bf16.mxu0 %v2193_v15  ;;  %2328 = vmatpush3.bf16.msra.mxu1 %v2462_v16 }
 0x131   :  { %2329 = vmatprep.subr.bf16.mxu1 %v2463_v19 }
 0x133   :  { %1268 = vmatpush1.bf16.msra.mxu0 %v2192_v52 }
 0x134   :  { %1269 = vmatprep.subr.bf16.mxu0 %v2177_v20  ;;  %2330 = vmatpush3.bf16.msra.mxu1 %v2464_v21 }
 0x135   :  { %2331 = vmatprep.subr.bf16.mxu1 %v2465_v24 }
 0x137   :  { %1270 = vmatpush1.bf16.msra.mxu0 %v2176_v25 }
 0x138   :  { %1271 = vmatprep.subr.bf16.mxu0 %v2161_v26  ;;  %2332 = vmatpush3.bf16.msra.mxu1 %v2466_v27 }
 0x139   :  { %2333 = vmatprep.subr.bf16.mxu1 %v2467_v30 }
 0x13b   :  { %1272 = vmatpush1.bf16.msra.mxu0 %v2160_v31  ;;  %v2490_v31 = vld [vmem:[#allocation5 + $0x138] sm:$0xff]  }
 0x13c   :  { %1273 = vmatprep.subr.bf16.mxu0 %v2145_v32  ;;  %2334 = vmatpush3.bf16.msra.mxu1 %v2468_v33  ;;  %v2491_v33 = vld [vmem:[#allocation5 + $0x170] sm:$0xff]  }
 0x13d   :  { %2335 = vmatprep.subr.bf16.mxu1 %v2469_v36  ;;  %v2494_v36 = vld [vmem:[#allocation5 + $0x128] sm:$0xff]  }
 0x13f   :  { %1274 = vmatpush1.bf16.msra.mxu0 %v2144_v37 }
 0x140   :  { %1275 = vmatprep.subr.bf16.mxu0 %v2129_v38  ;;  %2336 = vmatpush3.bf16.msra.mxu1 %v2470_v39  ;;  %v2495_v38 = vld [vmem:[#allocation5 + $0x160] sm:$0xff]  }
 0x141   :  { %2337 = vmatprep.subr.bf16.mxu1 %v2471_v40 }
 0x143   :  { %1276 = vmatpush1.bf16.msra.mxu0 %v2128_v41 }
 0x144   :  { %2338 = vmatpush3.bf16.msra.mxu1 %v2472_v42  ;;  %2345 = vmatprep.subr.bf16.mxu0 %v2473_v43  ;;  %v2496_v42 = vld [vmem:[#allocation5 + $0x120] sm:$0xff]   ;;  %v2497_v43 = vld [vmem:[#allocation5 + $0x158] sm:$0xff]  }
 0x145   :  { %2367 = vmatprep.subr.bf16.mxu1 %v2489_v50 }
 0x146   :  { %1294 = vmatmul.mubr.bf16.vlgmr.msra.gmra.mxu0 %v2758_v1  ;;  %v2484_v1 = vld [vmem:[#allocation5 + $0x90] sm:$0xff]  }
 0x147   :  { %2346 = vmatpush3.bf16.msra.mxu0 %v2474_v44  ;;  %v2498_v44 = vld [vmem:[#allocation5 + $0x118] sm:$0xff]  }
 0x148   :  { %2347 = vmatprep.subr.bf16.mxu0 %v2475_v45  ;;  %v2499_v45 = vld [vmem:[#allocation5 + $0x150] sm:$0xff]  }
 0x14b   :  { %2348 = vmatpush3.bf16.msra.mxu0 %v2476_v46  ;;  %v2500_v46 = vld [vmem:[#allocation5 + $0x110] sm:$0xff]  }
 0x14c   :  { %2349 = vmatprep.subr.bf16.mxu0 %v2477_v47  ;;  %v2501_v47 = vld [vmem:[#allocation5 + $0x148] sm:$0xff]  }
 0x14f   :  { %2350 = vmatpush3.bf16.msra.mxu0 %v2478_v48  ;;  %v2502_v48 = vld [vmem:[#allocation5 + $0x108] sm:$0xff]  }
 0x150   :  { %2351 = vmatprep.subr.bf16.mxu0 %v2479_v49 }
 0x153   :  { %2352 = vmatpush3.bf16.msra.mxu0 %v2480_v51 }
 0x154   :  { %2353 = vmatprep.subr.bf16.mxu0 %v2481_v53  ;;  %v2503_v53 = vld [vmem:[#allocation5 + $0x140] sm:$0xff]  }
 0x157   :  { %2354 = vmatpush3.bf16.msra.mxu0 %v2482_v54 }
 0x158   :  { %2355 = vmatprep.subr.bf16.mxu0 %v2483_v55 }
 0x15b   :  { %2356 = vmatpush3.bf16.msra.mxu0 %v2484_v1 }
 0x15c   :  { %2357 = vmatprep.subr.bf16.mxu0 %v2485_v56 }
 0x15f   :  { %2358 = vmatpush3.bf16.msra.mxu0 %v2486_v57 }
 0x160   :  { %2359 = vmatprep.subr.bf16.mxu0 %v2487_v58 }
 0x163   :  { %2360 = vmatpush3.bf16.msra.mxu0 %v2488_v59 }
 0x164   :  { %2389 = vmatprep.subr.bf16.mxu0 %v2505_v60  ;;  %v2504_v60 = vld [vmem:[#allocation5 + $0x100] sm:$0xff]  }
 0x186   :  { %v175_v63 = vpop.f32.mrf.mxu0  ;;  %v1008_v0 = vpop.f32.mrf.mxu1 }
 0x187   :  { %v2242_v2 = vmul.f32 -1.442695, %v1008_v0  ;;  %v2776_v3 = vsel %vm183_vm1, %v175_v63, -1e+30 }
 0x188   :  { %v1010_v5 = vpop.f32.mrf.mxu1  ;;  %185 = vmax.xlane.f32.xlu0 %v2776_v3  ;;  %v2429_v6 = vpop.f32.mrf.mxu0 }
 0x189   :  { %2523 = vpow2.f32 %v2242_v2  ;;  %v2243_v7 = vmul.f32 -1.442695, %v1010_v5 }
 0x18a   :  { %v178_v8 = vpop.f32.mrf.mxu0  ;;  %v1012_v4 = vpop.f32.mrf.mxu1 }
 0x18b   :  { %2525 = vpow2.f32 %v2243_v7  ;;  %v2506_v7 = vld [vmem:[#allocation5 + $0x1b8] sm:$0xff]   ;;  %v2507_v4 = vld [vmem:[#allocation5 + $0x1f0] sm:$0xff]  }
 0x18c   :  { %v2430_v9 = vpop.f32.mrf.mxu0  ;;  %v1013_v10 = vpop.f32.mrf.mxu1 }
 0x18d   :  { %v2508_v9 = vld [vmem:[#allocation5 + $0x1b0] sm:$0xff]   ;;  %v2509_v10 = vld [vmem:[#allocation5 + $0x1e8] sm:$0xff]  }
 0x196   :  { %v2524_v11 = vpop.eup %2523 }
 0x197   :  { %v1308_v12 = vadd.f32 1.0, %v2524_v11  ;;  %v2510_v11 = vld [vmem:[#allocation5 + $0x1a8] sm:$0xff]  }
 0x198   :  { %v2526_v13 = vpop.eup %2525 }
 0x199   :  { %2527 = vrcp.f32 %v1308_v12  ;;  %v1309_v14 = vadd.f32 1.0, %v2526_v13  ;;  %v2511_v13 = vld [vmem:[#allocation5 + $0x1e0] sm:$0xff]  }
 0x19b   :  { %2529 = vrcp.f32 %v1309_v14 }
 0x1a6   :  { %v2528_v15 = vpop.eup %2527  ;;  %v1049_v16 = vpop.f32.mrf.mxu0 }
 0x1a7   :  { %v1090_v17 = vpop.f32.mrf.mxu1  ;;  %v1314_v18 = vmul.f32 %v2528_v15, %v1008_v0 }
 0x1a8   :  { %v2260_v19 = vmul.f32 -1.442695, %v1090_v17  ;;  %v2530_v52 = vpop.eup %2529  ;;  %v1051_v20 = vpop.f32.mrf.mxu0 }
 0x1a9   :  { %v1092_v21 = vpop.f32.mrf.mxu1  ;;  %v1315_v22 = vmul.f32 %v2530_v52, %v1010_v5  ;;  %v1316_v24 = vmul.f32 %v1314_v18, %v1049_v16  ;;  %v2513_v18 = vld [vmem:[#allocation5 + $0x1d8] sm:$0xff]   ;;  %v2515_v52 = vld [vmem:[#allocation5 + $0x1d0] sm:$0xff]  }
 0x1aa   :  { %2531 = vpow2.f32 %v2260_v19  ;;  %v2261_v23 = vmul.f32 -1.442695, %v1092_v21  ;;  %v1053_v25 = vpop.f32.mrf.mxu0  ;;  %v2514_v19 = vld [vmem:[#allocation5 + $0x198] sm:$0xff]  }
 0x1ab   :  { %v1094_v26 = vpop.f32.mrf.mxu1  ;;  %v1317_v27 = vmul.f32 %v1315_v22, %v1051_v20  ;;  %v1318_v32 = vpack.c.bf16 %v1316_v24, %v1316_v24  ;;  %v2516_v20 = vld [vmem:[#allocation5 + $0x190] sm:$0xff]   ;;  %v2518_v22 = vld [vmem:[#allocation5 + $0x188] sm:$0xff]  }
 0x1ac   :  { %2533 = vpow2.f32 %v2261_v23  ;;  %v1054_v28 = vpop.f32.mrf.mxu0  ;;  %v2519_v26 = vld [vmem:[#allocation5 + $0x1c0] sm:$0xff]  }
 0x1ad   :  { %v1095_v29 = vpop.f32.mrf.mxu1  ;;  %v1319_v30 = vpack.c.bf16 %v1317_v27, %v1317_v27 }
 0x1af   :  { %1480 = vmatprep.mubr.bf16.mxu1 %v1319_v30 }
 0x1b0   :  { %1481 = vmatmul.mubr.bf16.vlgmr.msra.gmra.mxu1 %v1318_v32 }
 0x1b1   :  { %2368 = vmatpush3.bf16.msra.mxu1 %v2490_v31 }
 0x1b2   :  { %2369 = vmatprep.subr.bf16.mxu1 %v2491_v33 }
 0x1b5   :  { %2370 = vmatpush3.bf16.msra.mxu1 %v2492_v34  ;;  %v2520_v34 = vld [vmem:[#allocation5 + $0x180] sm:$0xff]  }
 0x1b6   :  { %2371 = vmatprep.subr.bf16.mxu1 %v2493_v35 }
 0x1b7   :  { %v2532_v37 = vpop.eup %2531 }
 0x1b8   :  { %v1501_v39 = vadd.f32 1.0, %v2532_v37 }
 0x1b9   :  { %v2534_v40 = vpop.eup %2533  ;;  %2372 = vmatpush3.bf16.msra.mxu1 %v2494_v36 }
 0x1ba   :  { %2535 = vrcp.f32 %v1501_v39  ;;  %v1502_v41 = vadd.f32 1.0, %v2534_v40  ;;  %2373 = vmatprep.subr.bf16.mxu1 %v2495_v38 }
 0x1bc   :  { %2537 = vrcp.f32 %v1502_v41 }
 0x1bd   :  { %2374 = vmatpush3.bf16.msra.mxu1 %v2496_v42 }
 0x1be   :  { %2375 = vmatprep.subr.bf16.mxu1 %v2497_v43 }
 0x1c1   :  { %2376 = vmatpush3.bf16.msra.mxu1 %v2498_v44 }
 0x1c2   :  { %2377 = vmatprep.subr.bf16.mxu1 %v2499_v45 }
 0x1c5   :  { %2378 = vmatpush3.bf16.msra.mxu1 %v2500_v46 }
 0x1c6   :  { %v1131_v50 = vpop.f32.mrf.mxu0  ;;  %v1172_v51 = vpop.f32.mrf.mxu1  ;;  %2379 = vmatprep.subr.bf16.mxu1 %v2501_v47 }
 0x1c7   :  { %v2536_v49 = vpop.eup %2535  ;;  %v2278_v55 = vmul.f32 -1.442695, %v1172_v51 }
 0x1c8   :  { %v1507_v54 = vmul.f32 %v2536_v49, %v1090_v17  ;;  %v1133_v56 = vpop.f32.mrf.mxu0  ;;  %v1174_v57 = vpop.f32.mrf.mxu1  ;;  %v2512_v17 = vld [vmem:[#allocation5 + $0x1a0] sm:$0xff]  }
 0x1c9   :  { %v2538_v1 = vpop.eup %2537  ;;  %2539 = vpow2.f32 %v2278_v55  ;;  %v2279_v59 = vmul.f32 -1.442695, %v1174_v57  ;;  %2380 = vmatpush3.bf16.msra.mxu1 %v2502_v48 }
 0x1ca   :  { %v1508_v58 = vmul.f32 %v2538_v1, %v1092_v21  ;;  %v1509_v61 = vmul.f32 %v1507_v54, %v1131_v50  ;;  %v1135_v62 = vpop.f32.mrf.mxu0  ;;  %v1176_v63 = vpop.f32.mrf.mxu1  ;;  %2381 = vmatprep.subr.bf16.mxu1 %v2503_v53  ;;  %v2517_v21 = vld [vmem:[#allocation5 + $0x1c8] sm:$0xff]  }
 0x1cb   :  { %2541 = vpow2.f32 %v2279_v59 }
 0x1cc   :  { %v1510_v0 = vmul.f32 %v1508_v58, %v1133_v56  ;;  %v1136_v2 = vpop.f32.mrf.mxu0  ;;  %v1177_v5 = vpop.f32.mrf.mxu1  ;;  %v1511_v8 = vpack.c.bf16 %v1509_v61, %v1509_v61 }
 0x1cd   :  { %2382 = vmatpush3.bf16.msra.mxu1 %v2504_v60 }
 0x1ce   :  { %v1512_v6 = vpack.c.bf16 %v1510_v0, %v1510_v0 }
 0x1d0   :  { %1674 = vmatprep.mubr.bf16.mxu0 %v1512_v6 }
 0x1d1   :  { %1675 = vmatmul.mubr.bf16.vlgmr.msra.gmra.mxu0 %v1511_v8 }
 0x1d2   :  { %2390 = vmatpush3.bf16.msra.mxu0 %v2506_v7 }
 0x1d3   :  { %2391 = vmatprep.subr.bf16.mxu0 %v2507_v4 }
 0x1d6   :  { %2392 = vmatpush3.bf16.msra.mxu0 %v2508_v9  ;;  %v2540_v12 = vpop.eup %2539 }
 0x1d7   :  { %2393 = vmatprep.subr.bf16.mxu0 %v2509_v10  ;;  %v1694_v14 = vadd.f32 1.0, %v2540_v12 }
 0x1d8   :  { %v2542_v15 = vpop.eup %2541 }
 0x1d9   :  { %2543 = vrcp.f32 %v1694_v14  ;;  %v1695_v16 = vadd.f32 1.0, %v2542_v15 }
 0x1da   :  { %2394 = vmatpush3.bf16.msra.mxu0 %v2510_v11 }
 0x1db   :  { %2395 = vmatprep.subr.bf16.mxu0 %v2511_v13  ;;  %2545 = vrcp.f32 %v1695_v16 }
 0x1de   :  { %2396 = vmatpush3.bf16.msra.mxu0 %v2512_v17 }
 0x1df   :  { %2397 = vmatprep.subr.bf16.mxu0 %v2513_v18 }
 0x1e2   :  { %2398 = vmatpush3.bf16.msra.mxu0 %v2514_v19 }
 0x1e3   :  { %2399 = vmatprep.subr.bf16.mxu0 %v2515_v52 }
 0x1e6   :  { %2400 = vmatpush3.bf16.msra.mxu0 %v2516_v20  ;;  %v2544_v23 = vpop.eup %2543  ;;  %v1213_v24 = vpop.f32.mrf.mxu0 }
 0x1e7   :  { %v1254_v25 = vpop.f32.mrf.mxu1  ;;  %2401 = vmatprep.subr.bf16.mxu0 %v2517_v21  ;;  %v1700_v27 = vmul.f32 %v2544_v23, %v1172_v51 }
 0x1e8   :  { %v2296_v28 = vmul.f32 -1.442695, %v1254_v25  ;;  %v2546_v29 = vpop.eup %2545  ;;  %v1215_v30 = vpop.f32.mrf.mxu0 }
 0x1e9   :  { %v1256_v31 = vpop.f32.mrf.mxu1  ;;  %v1701_v32 = vmul.f32 %v2546_v29, %v1174_v57  ;;  %v1702_v35 = vmul.f32 %v1700_v27, %v1213_v24 }
 0x1ea   :  { %2547 = vpow2.f32 %v2296_v28  ;;  %v2297_v33 = vmul.f32 -1.442695, %v1256_v31  ;;  %2402 = vmatpush3.bf16.msra.mxu0 %v2518_v22  ;;  %v1217_v36 = vpop.f32.mrf.mxu0 }
 0x1eb   :  { %v1258_v37 = vpop.f32.mrf.mxu1  ;;  %2403 = vmatprep.subr.bf16.mxu0 %v2519_v26  ;;  %v1703_v38 = vmul.f32 %v1701_v32, %v1215_v30  ;;  %v1704_v42 = vpack.c.bf16 %v1702_v35, %v1702_v35  ;;  %v2657_v26 = vmov 1   ;;  %v2658_v30 = vmov 2  }
 0x1ec   :  { %2549 = vpow2.f32 %v2297_v33  ;;  %v1218_v39 = vpop.f32.mrf.mxu0  ;;  %2445 = vset.pattern.permute.xlu1 %v2657_v26 }
 0x1ed   :  { %v1259_v40 = vpop.f32.mrf.mxu1  ;;  %v1705_v41 = vpack.c.bf16 %v1703_v38, %v1703_v38 }
 0x1ee   :  { %2404 = vmatpush3.bf16.msra.mxu0 %v2520_v34 }
 0x1ef   :  { %1867 = vmatprep.mubr.bf16.mxu1 %v1705_v41 }
 0x1f0   :  { %1868 = vmatmul.mubr.bf16.vlgmr.msra.gmra.mxu1 %v1704_v42 }
 0x1f7   :  { %v2548_v43 = vpop.eup %2547 }
 0x1f8   :  { %v1887_v44 = vadd.f32 1.0, %v2548_v43 }
 0x1f9   :  { %v2550_v45 = vpop.eup %2549 }
 0x1fa   :  { %2551 = vrcp.f32 %v1887_v44  ;;  %v1888_v46 = vadd.f32 1.0, %v2550_v45 }
 0x1fc   :  { %2553 = vrcp.f32 %v1888_v46 }
 0x206   :  { %v1295_v48 = vpop.f32.mrf.mxu0 }
 0x207   :  { %v2552_v47 = vpop.eup %2551 }
 0x208   :  { %v1893_v49 = vmul.f32 %v2552_v47, %v1254_v25  ;;  %v1297_v51 = vpop.f32.mrf.mxu0 }
 0x209   :  { %v2554_v50 = vpop.eup %2553 }
 0x20a   :  { %v1894_v53 = vmul.f32 %v2554_v50, %v1256_v31  ;;  %v1895_v54 = vmul.f32 %v1893_v49, %v1295_v48  ;;  %v1299_v55 = vpop.f32.mrf.mxu0  ;;  %v2659_v31 = vmov 3  }
 0x20c   :  { %v1896_v1 = vmul.f32 %v1894_v53, %v1297_v51  ;;  %v1300_v56 = vpop.f32.mrf.mxu0  ;;  %v1897_v58 = vpack.c.bf16 %v1895_v54, %v1895_v54 }
 0x20e   :  { %v1898_v57 = vpack.c.bf16 %v1896_v1, %v1896_v1 }
 0x210   :  { %2060 = vmatprep.mubr.bf16.mxu0 %v1898_v57 }
 0x211   :  { %2061 = vmatmul.mubr.bf16.vlgmr.msra.gmra.mxu0 %v1897_v58  ;;  %v186_v59 = vpop.xlane.xlu0 %185 }
 0x212   :  { %v187_v60 = vsub.f32 %v2776_v3, %v186_v59 }
 0x214   :  { %v188_v61 = vmul.f32 1.442695, %v187_v60 }
 0x216   :  { %2555 = vpow2.f32 %v188_v61 }
 0x223   :  { %v2556_v62 = vpop.eup %2555 }
 0x224   :  { %190 = vadd.xlane.f32.xlu1 %v2556_v62 }
 0x270   :  { %v2339_v63 = vpop.f32.mrf.mxu1 }
 0x272   :  { %v2340_v0 = vpop.f32.mrf.mxu1 }
 0x273   :  { %v2341_v2 = vadd.f32 %v2340_v0, %v2339_v63 }
 0x274   :  { %v2342_v5 = vpop.f32.mrf.mxu1 }
 0x276   :  { %v2343_v6 = vpop.f32.mrf.mxu1 }
 0x291   :  { %v2361_v7 = vpop.f32.mrf.mxu0 }
 0x293   :  { %v2362_v8 = vpop.f32.mrf.mxu0 }
 0x294   :  { %v2363_v4 = vadd.f32 %v2362_v8, %v2361_v7 }
 0x295   :  { %v2364_v9 = vpop.f32.mrf.mxu0 }
 0x297   :  { %v2365_v10 = vpop.f32.mrf.mxu0 }
 0x2ad   :  { %v191_v11 = vpop.xlane.xlu1 %190 }
 0x2ae   :  { %2557 = vrcp.f32 %v191_v11 }
 0x2b0   :  { %v2383_v12 = vpop.f32.mrf.mxu1 }
 0x2b2   :  { %v2384_v13 = vpop.f32.mrf.mxu1 }
 0x2b3   :  { %v2385_v14 = vadd.f32 %v2384_v13, %v2383_v12 }
 0x2b4   :  { %v2386_v3 = vpop.f32.mrf.mxu1 }
 0x2b6   :  { %v2387_v15 = vpop.f32.mrf.mxu1 }
 0x2bb   :  { %v2558_v16 = vpop.eup %2557 }
 0x2bc   :  { %v193_v17 = vmul.f32 %v2558_v16, %v2556_v62 }
 0x2be   :  { %194 = vmax.xlane.f32.xlu1 %v193_v17 }
 0x2d1   :  { %v2405_v18 = vpop.f32.mrf.mxu0 }
 0x2d3   :  { %v2406_v19 = vpop.f32.mrf.mxu0 }
 0x2d4   :  { %v2407_v52 = vadd.f32 %v2406_v19, %v2405_v18 }
 0x2d5   :  { %v2408_v20 = vpop.f32.mrf.mxu0 }
 0x2d7   :  { %v2409_v21 = vpop.f32.mrf.mxu0 }
 0x347   :  { %v195_v22 = vpop.xlane.xlu1 %194 }
 0x348   :  { %vm196_vm2 = vcmp.ge.f32.partialorder %v193_v17, %v195_v22 }
 0x349   :  { %v197_v23 = vsel %vm196_vm2, -1.0, %v193_v17 }
 0x34a   :  { %198 = vmax.xlane.f32.xlu0 %v197_v23 }
 0x3d3   :  { %v199_v24 = vpop.xlane.xlu0 %198 }
 0x3d4   :  { %vm200_vm3 = vcmp.ge.f32.partialorder %v193_v17, %v199_v24 }
 0x3d5   :  { %v201_v25 = vsel %vm200_vm3, %v193_v17, 0.0 }
 0x3d6   :  { %202 = vadd.xlane.f32.xlu1 %v201_v25 }
 0x45f   :  { %v203_v27 = vpop.xlane.xlu1 %202 }
 0x460   :  { %2559 = vrcp.f32 %v203_v27 }
 0x46d   :  { %v2560_v28 = vpop.eup %2559 }
 0x46e   :  { %v205_v29 = vmul.f32 %v2560_v28, %v201_v25 }
 0x470   :  { %1683 = vperm.xlu1 %2445, %v205_v29   ;;  %1490 = vperm.xlu0 %2444, %v205_v29  }
 0x474   :  { %2446 = vset.pattern.permute.xlu1 %v2658_v30  ;;  %2448 = vset.pattern.permute.xlu0 %v2659_v31 }
 0x475   :  { %1876 = vperm.xlu1 %2446, %v205_v29  }
 0x479   :  { %2447 = vset.pattern.permute.xlu1 %v2659_v31 }
 0x47a   :  { %2069 = vperm.xlu1 %2447, %v205_v29  }
 0x47b   :  { %2612 = shalt.err (!%p2609_p0)
}
 0x47c   :  { %2094 = dma.vmem_to_hbm [thread:$0]  %s2092_s8, 128, %s2793_s7, [#allocation9]  }
 0x47d   :  { %s2661_s12 = smov [#allocation7]  }
 0x47e   :  { %s2081_s13 = sshll.u32 %s2661_s12, 4  ;;  %s2082_s13 = int_to_ptr.vmem [resolvable:$true] %s2081_s13 }
 0x47f   :  { %s2621_s4 = scalar_lea.vmem %s2082_s13, 128  ;;  %p2626_p2 = scmp.lt.s32.totalorder %s2082_s13, %s2082_s13 }
 0x480   :  { %p2622_p1 = scmp.ne.s32.totalorder %s2082_s13, %s2621_s4  ;;  %p2627_p3 = scmp.lt.s32.totalorder %s2621_s4, %s2621_s4 }
 0x482   :  { %p2628_p4 = por %p2627_p3, %p2626_p2 }
 0x484   :  { %p2629_p5 = pnand %p2628_p4, %p2622_p1 }
 0x4eb   :  { %v1684_v32 = vpop.permute.xlu1 %1683  ;;  %v1491_v33 = vpop.permute.xlu0 %1490 }
 0x4ec   :  { %v1686_v34 = vmul.f32 %v2363_v4, %v1684_v32  ;;  %v1493_v35 = vmul.f32 %v2341_v2, %v1491_v33 }
 0x4ee   :  { %v1687_v36 = vadd.f32 %v1686_v34, %v1493_v35 }
 0x4f0   :  { %v1877_v37 = vpop.permute.xlu1 %1876 }
 0x4f1   :  { %v1879_v38 = vmul.f32 %v2385_v14, %v1877_v37 }
 0x4f3   :  { %v1880_v39 = vadd.f32 %v1879_v38, %v1687_v36 }
 0x4f5   :  { %v2070_v40 = vpop.permute.xlu1 %2069 }
 0x4f6   :  { %v2072_v41 = vmul.f32 %v2407_v52, %v2070_v40 }
 0x4f8   :  { %v2073_v42 = vadd.f32 %v2072_v41, %v1880_v39 }
 0x4fa   :  { %2074 = vst [vmem:[#allocation7] sm:$0xff] %v2073_v42 }
 0x4fb   :  { %2632 = shalt.err (!%p2629_p5)
}
 0x4fc   :  { %2084 = dma.vmem_to_hbm [thread:$0]  %s2082_s13, 128, %s2792_s6, [#allocation4]  }
 0x4fd   :  { %2645 = dma.done.wait [#allocation4], 128  }
 0x4fe   :  { %2646 = vsyncadd [#allocation4], 4294967168 }
 0x4ff   :  { %2647 = dma.done.wait [#allocation9], 128  }
 0x500   :  { %2648 = vsyncadd [#allocation9], 4294967168 }
 0x501   :  { %2101 = vsyncpa [#allocation3], 1 }
 0x502   :  { %2102 = vsyncpa [#allocation6], 1 }
 0x503   :  { %2103 = vsyncpa [#allocation4], 1 }
 0x504   :  { %2104 = vsyncpa [#allocation9], 1 }

</bundles_post_ra>
